<compile_context>
chip_gen: v6e
topology: v6e:2x2x1
jax: 0.10.0
libtpu: 0.0.40
codegen_flags: <defaults>
</compile_context>

<pallas_src>
import functools

import jax
import jax.numpy as jnp
from jax.experimental import pallas as pl
from jax.experimental.pallas import tpu as pltpu


def _round_up(x, m):
    return ((x + m - 1) // m) * m


def _pick_tile(total, cap, align):
    """Largest multiple of `align` that divides `total` and is <= cap."""
    t = max(align, min(cap, total))
    t = (t // align) * align
    while t > align and total % t != 0:
        t -= align
    if total % t != 0:
        t = total
    return t


# ---------------------------------------------------------------------------
# Fused per-layer kernel:
#   out = LorentzProj( [relu]( adj @ (x @ W) + b ) )
# Grid = (row tiles i, reduction tiles k).  adj streams (tm, tk) tiles from
# HBM; x / W / b are VMEM-resident (constant index maps).  f32 accumulator in
# VMEM scratch, bias folded into its init, projection applied at the last k.
# ---------------------------------------------------------------------------
def _layer_kernel(x_ref, w_ref, adj_ref, b_ref, o_ref, acc_ref,
                  *, apply_relu, inv_curv, tk):
    k = pl.program_id(1)

    @pl.when(k == 0)
    def _init():
        # Fold the bias add into the accumulator init.
        acc_ref[...] = jnp.broadcast_to(b_ref[...], acc_ref.shape)

    # Fused feature transform for this k-chunk of nodes: t = x[k*tk:, :] @ W.
    row0 = pl.multiple_of(k * tk, 128)
    t = jnp.dot(x_ref[pl.ds(row0, tk), :], w_ref[...],
                preferred_element_type=jnp.float32)

    # Neighborhood aggregation (MXU, f32 accumulate).
    acc_ref[...] += jnp.dot(adj_ref[...], t.astype(adj_ref.dtype),
                            preferred_element_type=jnp.float32)

    @pl.when(k == pl.num_programs(1) - 1)
    def _finalize():
        h = acc_ref[...]
        if apply_relu:
            h = jnp.maximum(h, 0.0)
        # Lorentz projection: time coord (col 0) <- sqrt(1/k + ||space||^2).
        # Mask col 0 out of the squared sum (avoids negative under rounding).
        col = jax.lax.broadcasted_iota(jnp.int32, h.shape, 1)
        h_space = jnp.where(col == 0, 0.0, h)
        time = jnp.sqrt(
            inv_curv + jnp.sum(h_space * h_space, axis=-1, keepdims=True))
        o_ref[...] = jnp.where(col == 0, time, h).astype(o_ref.dtype)


def _lorentz_gnn_layer(x, w, adj, b, *, apply_relu, inv_curv, out_dtype):
    Np, Dp = x.shape
    Hp = w.shape[1]

    # Row-tile: big, but keep >=2 tiles on the parallel axis (v7x megacore).
    tm_cap = 512
    if Np >= 256:
        tm_cap = min(tm_cap, Np // 2)
    tm = _pick_tile(Np, tm_cap, 16)
    # Reduction tile: as large as practical (adj DMA efficiency).
    tk = _pick_tile(Np, 1024, 128)

    adj_b = adj.dtype.itemsize
    x_b = x.dtype.itemsize
    w_b = w.dtype.itemsize
    out_b = jnp.dtype(out_dtype).itemsize

    # Explicit VMEM budget (v5e scoped default is only 16 MiB).
    vmem_need = (2 * tm * tk * adj_b        # adj tiles, double-buffered
                 + 2 * Np * Dp * x_b        # resident x
                 + 2 * Dp * Hp * w_b        # resident W
                 + 2 * Hp * 4               # resident bias
                 + tm * Hp * 4              # f32 accumulator
                 + 2 * tm * Hp * out_b)     # output tiles
    vmem_limit = int(min(max(2 * vmem_need, 32 * 1024 * 1024),
                         96 * 1024 * 1024))

    cost = pl.CostEstimate(
        flops=2 * Np * Np * Hp + 2 * (Np // tm) * Np * Dp * Hp,
        transcendentals=Np,
        bytes_accessed=(Np * Np * adj_b + Np * Dp * x_b + Dp * Hp * w_b
                        + Hp * 4 + Np * Hp * out_b),
    )

    kernel = functools.partial(_layer_kernel, apply_relu=apply_relu,
                               inv_curv=inv_curv, tk=tk)
    return pl.pallas_call(
        kernel,
        out_shape=jax.ShapeDtypeStruct((Np, Hp), out_dtype),
        grid_spec=pltpu.PrefetchScalarGridSpec(
            num_scalar_prefetch=0,
            grid=(Np // tm, Np // tk),
            in_specs=[
                pl.BlockSpec((Np, Dp), lambda i, k: (0, 0)),   # x (resident)
                pl.BlockSpec((Dp, Hp), lambda i, k: (0, 0)),   # W (resident)
                pl.BlockSpec((tm, tk), lambda i, k: (i, k)),   # adj (streamed)
                pl.BlockSpec((1, Hp), lambda i, k: (0, 0)),    # bias (resident)
            ],
            out_specs=pl.BlockSpec((tm, Hp), lambda i, k: (i, 0)),
            scratch_shapes=[pltpu.VMEM((tm, Hp), jnp.float32)],
        ),
        compiler_params=pltpu.CompilerParams(
            dimension_semantics=("parallel", "arbitrary"),
            vmem_limit_bytes=vmem_limit),
        cost_estimate=cost,
    )(x, w, adj, b)


# ---------------------------------------------------------------------------
# Padded forward (jitted) and one-time input preparation.
# ---------------------------------------------------------------------------
@functools.partial(jax.jit, static_argnames=("curv",))
def hyperse_forward_padded(xp, adjp, w1p, b1p, w2p, b2p, curv=1.0):
    inv_curv = 1.0 / curv
    # layer 1: h1 = LorentzProj(relu(adj @ (x @ W1) + b1))   -> bf16
    h1 = _lorentz_gnn_layer(xp, w1p, adjp, b1p, apply_relu=True,
                            inv_curv=inv_curv, out_dtype=xp.dtype)
    # layer 2: h2 = LorentzProj(adj @ (h1 @ W2) + b2)        -> f32
    h2 = _lorentz_gnn_layer(h1, w2p, adjp, b2p, apply_relu=False,
                            inv_curv=inv_curv, out_dtype=jnp.float32)
    return h2


def prepare_inputs(x, adj, w1, b1, w2, b2, mxu_dtype=jnp.bfloat16):
    """Pad to lane-dense 128-multiples and cast MXU operands to bf16.

    Done once, outside the per-call hot path (adj is constant across layers
    and calls).  N is padded only to a multiple of 128 (not of the tile size).
    """
    N, D = x.shape
    H = w1.shape[1]
    O = w2.shape[1]
    Np = _round_up(N, 128)
    Dp = _round_up(D, 128)
    Hp = _round_up(H, 128)
    Op = _round_up(O, 128)

    def pad(a, r, c, dt):
        z = jnp.zeros((r, c), jnp.float32)
        return z.at[:a.shape[0], :a.shape[1]].set(a).astype(dt)

    xp = pad(x, Np, Dp, mxu_dtype)
    adjp = pad(adj, Np, Np, mxu_dtype)
    w1p = pad(w1, Dp, Hp, mxu_dtype)
    w2p = pad(w2, Hp, Op, mxu_dtype)
    b1p = pad(b1, 1, Hp, jnp.float32)
    b2p = pad(b2, 1, Op, jnp.float32)
    return xp, adjp, w1p, b1p, w2p, b2p


# ---------------------------------------------------------------------------
# Reference (pure JAX) matching the kernel's mixed precision exactly:
# bf16 MXU operands, f32 accumulation, f32 elementwise math.
# ---------------------------------------------------------------------------
def _lorentz_project_ref(h, inv_curv=1.0):
    col = jax.lax.broadcasted_iota(jnp.int32, h.shape, 1)
    h_space = jnp.where(col == 0, 0.0, h)
    time = jnp.sqrt(inv_curv + jnp.sum(h_space * h_space, axis=-1,
                                       keepdims=True))
    return jnp.where(col == 0, time, h)


def _reference(x, adj, w1, b1, w2, b2, mxu_dtype=jnp.bfloat16, curv=1.0):
    md = mxu_dtype
    inv_curv = 1.0 / curv
    t1 = jnp.dot(x.astype(md), w1.astype(md),
                 preferred_element_type=jnp.float32).astype(md)
    h1 = jnp.dot(adj.astype(md), t1, preferred_element_type=jnp.float32) + b1
    h1 = jnp.maximum(h1, 0.0)
    h1 = _lorentz_project_ref(h1, inv_curv).astype(md)
    t2 = jnp.dot(h1, w2.astype(md),
                 preferred_element_type=jnp.float32).astype(md)
    h2 = jnp.dot(adj.astype(md), t2, preferred_element_type=jnp.float32) + b2
    return _lorentz_project_ref(h2, inv_curv)


if __name__ == "__main__":
    key = jax.random.PRNGKey(0)
    k_x, k_a, k_w1, k_b1, k_w2, k_b2 = jax.random.split(key, 6)

    # Small shapes consistent with the module: N nodes, in_dim -> hidden -> out.
    # N is not a multiple of 128 to exercise the padding path.
    N, D_in, H_dim, D_out = 300, 48, 32, 32

    x = jax.random.normal(k_x, (N, D_in), dtype=jnp.float32)

    # Deterministic symmetric row-normalized adjacency with self-loops.
    a_raw = (jax.random.uniform(k_a, (N, N)) < 0.1).astype(jnp.float32)
    a_sym = jnp.clip(a_raw + a_raw.T, 0.0, 1.0) + jnp.eye(N, dtype=jnp.float32)
    deg = jnp.sum(a_sym, axis=1, keepdims=True)
    adj = a_sym / deg

    # Deterministic synthetic parameters (no checkpoint load).
    w1 = jax.random.normal(k_w1, (D_in, H_dim), jnp.float32) / jnp.sqrt(1.0 * D_in)
    b1 = 0.05 * jax.random.normal(k_b1, (1, H_dim), jnp.float32)
    w2 = jax.random.normal(k_w2, (H_dim, D_out), jnp.float32) / jnp.sqrt(1.0 * H_dim)
    b2 = 0.05 * jax.random.normal(k_b2, (1, D_out), jnp.float32)

    # One-time padding / bf16 cast, hoisted out of the (jitted) hot path.
    padded = prepare_inputs(x, adj, w1, b1, w2, b2)

    out_padded = hyperse_forward_padded(*padded)
    out_padded = jax.block_until_ready(out_padded)
    out = out_padded[:N, :D_out]

    ref = _reference(x, adj, w1, b1, w2, b2)
    assert out.shape == (N, D_out)
    max_err = float(jnp.max(jnp.abs(out - ref)))
    assert jnp.allclose(out, ref, atol=2e-2, rtol=2e-2), max_err

    print("KERNEL_OK")
</pallas_src>

<mosaic_0001>
module attributes {stable_mosaic.version = 11 : i64} {
  func.func @_layer_kernel(%arg0: i32, %arg1: i32, %arg2: memref<384x128xbf16, #tpu.memory_space<vmem>>, %arg3: memref<128x128xbf16, #tpu.memory_space<vmem>>, %arg4: memref<192x384xbf16, #tpu.memory_space<vmem>>, %arg5: memref<1x128xf32, #tpu.memory_space<vmem>>, %arg6: memref<192x128xbf16, #tpu.memory_space<vmem>>, %arg7: memref<192x128xf32, #tpu.memory_space<vmem>>) attributes {dimension_semantics = [#tpu.dimension_semantics<parallel>, #tpu.dimension_semantics<arbitrary>], iteration_bounds = array<i64: 2, 1>, scalar_prefetch = 0 : i64, scratch_operands = 1 : i64, tpu.core_type = #tpu.core_type<tc>, window_params = [{pipeline_mode = #tpu.pipeline_mode<synchronous>, transform_indices = @transform_0, window_bounds = array<i64: 384, 128>}, {pipeline_mode = #tpu.pipeline_mode<synchronous>, transform_indices = @transform_1, window_bounds = array<i64: 128, 128>}, {transform_indices = @transform_2, window_bounds = array<i64: 192, 384>}, {pipeline_mode = #tpu.pipeline_mode<synchronous>, transform_indices = @transform_3, window_bounds = array<i64: 1, 128>}, {transform_indices = @transform_4, window_bounds = array<i64: 192, 128>}]} {
    %c0_i32 = arith.constant 0 : i32
    %0 = arith.cmpi eq, %arg1, %c0_i32 : i32
    %1 = arith.extui %0 : i1 to i32
    %c0_i32_0 = arith.constant 0 : i32
    %2 = arith.cmpi ne, %1, %c0_i32_0 : i32
    scf.if %2 {
      %c0_12 = arith.constant 0 : index
      %c0_13 = arith.constant 0 : index
      %18 = vector.load %arg5[%c0_12, %c0_13] : memref<1x128xf32, #tpu.memory_space<vmem>>, vector<1x128xf32>
      %19 = vector.shape_cast %18 : vector<1x128xf32> to vector<1x128xf32>
      %20 = vector.broadcast %19 : vector<1x128xf32> to vector<192x128xf32>
      %c0_14 = arith.constant 0 : index
      %c0_15 = arith.constant 0 : index
      %21 = vector.load %arg7[%c0_14, %c0_15] : memref<192x128xf32, #tpu.memory_space<vmem>>, vector<192x128xf32>
      tpu.vector_store %arg7[%c0_14, %c0_15], %20 {strides = array<i32>} : memref<192x128xf32, #tpu.memory_space<vmem>>, vector<192x128xf32>,
    } else {
    }
    %c384_i32 = arith.constant 384 : i32
    %3 = arith.muli %arg1, %c384_i32 : i32
    %4 = tpu.assume_multiple %3, 128 : i32
    %5 = arith.index_cast %4 : i32 to index
    %c0 = arith.constant 0 : index
    %6 = vector.load %arg2[%5, %c0] : memref<384x128xbf16, #tpu.memory_space<vmem>>, vector<384x128xbf16>
    %c0_1 = arith.constant 0 : index
    %c0_2 = arith.constant 0 : index
    %7 = vector.load %arg3[%c0_1, %c0_2] : memref<128x128xbf16, #tpu.memory_space<vmem>>, vector<128x128xbf16>
    %cst = arith.constant dense<0.000000e+00> : vector<384x128xf32>
    %8 = tpu.matmul %6, %7, %cst {dimension_numbers = #tpu.dot_dimension_numbers<[1], [0], [0], [1], [0, 0, 1, 1], [], []>} : vector<384x128xbf16>, vector<128x128xbf16>, vector<384x128xf32> -> vector<384x128xf32>
    %c0_3 = arith.constant 0 : index
    %c0_4 = arith.constant 0 : index
    %9 = vector.load %arg7[%c0_3, %c0_4] : memref<192x128xf32, #tpu.memory_space<vmem>>, vector<192x128xf32>
    %c0_5 = arith.constant 0 : index
    %c0_6 = arith.constant 0 : index
    %10 = vector.load %arg4[%c0_5, %c0_6] : memref<192x384xbf16, #tpu.memory_space<vmem>>, vector<192x384xbf16>
    %11 = arith.truncf %8 : vector<384x128xf32> to vector<384x128xbf16>
    %cst_7 = arith.constant dense<0.000000e+00> : vector<192x128xf32>
    %12 = tpu.matmul %10, %11, %cst_7 {dimension_numbers = #tpu.dot_dimension_numbers<[1], [0], [0], [1], [0, 0, 1, 1], [], []>} : vector<192x384xbf16>, vector<384x128xbf16>, vector<192x128xf32> -> vector<192x128xf32>
    %13 = arith.addf %9, %12 : vector<192x128xf32>
    %c0_8 = arith.constant 0 : index
    %c0_9 = arith.constant 0 : index
    %14 = vector.load %arg7[%c0_8, %c0_9] : memref<192x128xf32, #tpu.memory_space<vmem>>, vector<192x128xf32>
    tpu.vector_store %arg7[%c0_8, %c0_9], %13 {strides = array<i32>} : memref<192x128xf32, #tpu.memory_space<vmem>>, vector<192x128xf32>,
    %c0_i32_10 = arith.constant 0 : i32
    %15 = arith.cmpi eq, %arg1, %c0_i32_10 : i32
    %16 = arith.extui %15 : i1 to i32
    %c0_i32_11 = arith.constant 0 : i32
    %17 = arith.cmpi ne, %16, %c0_i32_11 : i32
    scf.if %17 {
      %c0_12 = arith.constant 0 : index
      %c0_13 = arith.constant 0 : index
      %18 = vector.load %arg7[%c0_12, %c0_13] : memref<192x128xf32, #tpu.memory_space<vmem>>, vector<192x128xf32>
      %cst_14 = arith.constant 0.000000e+00 : f32
      %19 = vector.broadcast %cst_14 : f32 to vector<192x128xf32>
      %20 = arith.maximumf %18, %19 : vector<192x128xf32>
      %21 = tpu.iota {dimensions = array<i32: 1>} : vector<192x128xi32>
      %c0_i32_15 = arith.constant 0 : i32
      %22 = vector.broadcast %c0_i32_15 : i32 to vector<192x128xi32>
      %23 = arith.cmpi eq, %21, %22 : vector<192x128xi32>
      %cst_16 = arith.constant 0.000000e+00 : f32
      %24 = vector.broadcast %cst_16 : f32 to vector<192x128xf32>
      %25 = arith.select %23, %24, %20 : vector<192x128xi1>, vector<192x128xf32>
      %26 = arith.mulf %25, %25 : vector<192x128xf32>
      %cst_17 = arith.constant dense<0.000000e+00> : vector<192xf32>
      %27 = vector.multi_reduction <add>, %26, %cst_17 [1] : vector<192x128xf32> to vector<192xf32>
      %28 = vector.shape_cast %27 : vector<192xf32> to vector<192x1xf32>
      %cst_18 = arith.constant 1.000000e+00 : f32
      %29 = vector.broadcast %cst_18 : f32 to vector<192x1xf32>
      %30 = arith.addf %29, %28 : vector<192x1xf32>
      %31 = math.sqrt %30 : vector<192x1xf32>
      %c0_i32_19 = arith.constant 0 : i32
      %32 = vector.broadcast %c0_i32_19 : i32 to vector<192x128xi32>
      %33 = arith.cmpi eq, %21, %32 : vector<192x128xi32>
      %34 = vector.shape_cast %31 : vector<192x1xf32> to vector<192x1xf32>
      %35 = vector.broadcast %34 : vector<192x1xf32> to vector<192x128xf32>
      %36 = arith.select %33, %35, %20 : vector<192x128xi1>, vector<192x128xf32>
      %37 = arith.truncf %36 : vector<192x128xf32> to vector<192x128xbf16>
      %c0_20 = arith.constant 0 : index
      %c0_21 = arith.constant 0 : index
      %38 = vector.load %arg6[%c0_20, %c0_21] : memref<192x128xbf16, #tpu.memory_space<vmem>>, vector<192x128xbf16>
      tpu.vector_store %arg6[%c0_20, %c0_21], %37 {strides = array<i32>} : memref<192x128xbf16, #tpu.memory_space<vmem>>, vector<192x128xbf16>,
    } else {
    }
    return
  }
  func.func @transform_0(%arg0: i32, %arg1: i32) -> (i32, i32) {
    %c0_i32 = arith.constant 0 : i32
    %c0_i32_0 = arith.constant 0 : i32
    %c0_i32_1 = arith.constant 0 : i32
    return %c0_i32, %c0_i32_0 : i32, i32
  }
  func.func @transform_1(%arg0: i32, %arg1: i32) -> (i32, i32) {
    %c0_i32 = arith.constant 0 : i32
    %c0_i32_0 = arith.constant 0 : i32
    %c0_i32_1 = arith.constant 0 : i32
    return %c0_i32, %c0_i32_0 : i32, i32
  }
  func.func @transform_2(%arg0: i32, %arg1: i32) -> (i32, i32) {
    %c0_i32 = arith.constant 0 : i32
    return %arg0, %arg1 : i32, i32
  }
  func.func @transform_3(%arg0: i32, %arg1: i32) -> (i32, i32) {
    %c0_i32 = arith.constant 0 : i32
    %c0_i32_0 = arith.constant 0 : i32
    %c0_i32_1 = arith.constant 0 : i32
    return %c0_i32, %c0_i32_0 : i32, i32
  }
  func.func @transform_4(%arg0: i32, %arg1: i32) -> (i32, i32) {
    %c0_i32 = arith.constant 0 : i32
    %c0_i32_0 = arith.constant 0 : i32
    return %arg0, %c0_i32 : i32, i32
  }
}

module attributes {stable_mosaic.version = 11 : i64} {
  func.func @_layer_kernel(%arg0: i32, %arg1: i32, %arg2: memref<384x128xbf16, #tpu.memory_space<vmem>>, %arg3: memref<128x128xbf16, #tpu.memory_space<vmem>>, %arg4: memref<192x384xbf16, #tpu.memory_space<vmem>>, %arg5: memref<1x128xf32, #tpu.memory_space<vmem>>, %arg6: memref<192x128xf32, #tpu.memory_space<vmem>>, %arg7: memref<192x128xf32, #tpu.memory_space<vmem>>) attributes {dimension_semantics = [#tpu.dimension_semantics<parallel>, #tpu.dimension_semantics<arbitrary>], iteration_bounds = array<i64: 2, 1>, scalar_prefetch = 0 : i64, scratch_operands = 1 : i64, tpu.core_type = #tpu.core_type<tc>, window_params = [{pipeline_mode = #tpu.pipeline_mode<synchronous>, transform_indices = @transform_0, window_bounds = array<i64: 384, 128>}, {pipeline_mode = #tpu.pipeline_mode<synchronous>, transform_indices = @transform_1, window_bounds = array<i64: 128, 128>}, {transform_indices = @transform_2, window_bounds = array<i64: 192, 384>}, {pipeline_mode = #tpu.pipeline_mode<synchronous>, transform_indices = @transform_3, window_bounds = array<i64: 1, 128>}, {transform_indices = @transform_4, window_bounds = array<i64: 192, 128>}]} {
    %c0_i32 = arith.constant 0 : i32
    %0 = arith.cmpi eq, %arg1, %c0_i32 : i32
    %1 = arith.extui %0 : i1 to i32
    %c0_i32_0 = arith.constant 0 : i32
    %2 = arith.cmpi ne, %1, %c0_i32_0 : i32
    scf.if %2 {
      %c0_12 = arith.constant 0 : index
      %c0_13 = arith.constant 0 : index
      %18 = vector.load %arg5[%c0_12, %c0_13] : memref<1x128xf32, #tpu.memory_space<vmem>>, vector<1x128xf32>
      %19 = vector.shape_cast %18 : vector<1x128xf32> to vector<1x128xf32>
      %20 = vector.broadcast %19 : vector<1x128xf32> to vector<192x128xf32>
      %c0_14 = arith.constant 0 : index
      %c0_15 = arith.constant 0 : index
      %21 = vector.load %arg7[%c0_14, %c0_15] : memref<192x128xf32, #tpu.memory_space<vmem>>, vector<192x128xf32>
      tpu.vector_store %arg7[%c0_14, %c0_15], %20 {strides = array<i32>} : memref<192x128xf32, #tpu.memory_space<vmem>>, vector<192x128xf32>,
    } else {
    }
    %c384_i32 = arith.constant 384 : i32
    %3 = arith.muli %arg1, %c384_i32 : i32
    %4 = tpu.assume_multiple %3, 128 : i32
    %5 = arith.index_cast %4 : i32 to index
    %c0 = arith.constant 0 : index
    %6 = vector.load %arg2[%5, %c0] : memref<384x128xbf16, #tpu.memory_space<vmem>>, vector<384x128xbf16>
    %c0_1 = arith.constant 0 : index
    %c0_2 = arith.constant 0 : index
    %7 = vector.load %arg3[%c0_1, %c0_2] : memref<128x128xbf16, #tpu.memory_space<vmem>>, vector<128x128xbf16>
    %cst = arith.constant dense<0.000000e+00> : vector<384x128xf32>
    %8 = tpu.matmul %6, %7, %cst {dimension_numbers = #tpu.dot_dimension_numbers<[1], [0], [0], [1], [0, 0, 1, 1], [], []>} : vector<384x128xbf16>, vector<128x128xbf16>, vector<384x128xf32> -> vector<384x128xf32>
    %c0_3 = arith.constant 0 : index
    %c0_4 = arith.constant 0 : index
    %9 = vector.load %arg7[%c0_3, %c0_4] : memref<192x128xf32, #tpu.memory_space<vmem>>, vector<192x128xf32>
    %c0_5 = arith.constant 0 : index
    %c0_6 = arith.constant 0 : index
    %10 = vector.load %arg4[%c0_5, %c0_6] : memref<192x384xbf16, #tpu.memory_space<vmem>>, vector<192x384xbf16>
    %11 = arith.truncf %8 : vector<384x128xf32> to vector<384x128xbf16>
    %cst_7 = arith.constant dense<0.000000e+00> : vector<192x128xf32>
    %12 = tpu.matmul %10, %11, %cst_7 {dimension_numbers = #tpu.dot_dimension_numbers<[1], [0], [0], [1], [0, 0, 1, 1], [], []>} : vector<192x384xbf16>, vector<384x128xbf16>, vector<192x128xf32> -> vector<192x128xf32>
    %13 = arith.addf %9, %12 : vector<192x128xf32>
    %c0_8 = arith.constant 0 : index
    %c0_9 = arith.constant 0 : index
    %14 = vector.load %arg7[%c0_8, %c0_9] : memref<192x128xf32, #tpu.memory_space<vmem>>, vector<192x128xf32>
    tpu.vector_store %arg7[%c0_8, %c0_9], %13 {strides = array<i32>} : memref<192x128xf32, #tpu.memory_space<vmem>>, vector<192x128xf32>,
    %c0_i32_10 = arith.constant 0 : i32
    %15 = arith.cmpi eq, %arg1, %c0_i32_10 : i32
    %16 = arith.extui %15 : i1 to i32
    %c0_i32_11 = arith.constant 0 : i32
    %17 = arith.cmpi ne, %16, %c0_i32_11 : i32
    scf.if %17 {
      %c0_12 = arith.constant 0 : index
      %c0_13 = arith.constant 0 : index
      %18 = vector.load %arg7[%c0_12, %c0_13] : memref<192x128xf32, #tpu.memory_space<vmem>>, vector<192x128xf32>
      %19 = tpu.iota {dimensions = array<i32: 1>} : vector<192x128xi32>
      %c0_i32_14 = arith.constant 0 : i32
      %20 = vector.broadcast %c0_i32_14 : i32 to vector<192x128xi32>
      %21 = arith.cmpi eq, %19, %20 : vector<192x128xi32>
      %cst_15 = arith.constant 0.000000e+00 : f32
      %22 = vector.broadcast %cst_15 : f32 to vector<192x128xf32>
      %23 = arith.select %21, %22, %18 : vector<192x128xi1>, vector<192x128xf32>
      %24 = arith.mulf %23, %23 : vector<192x128xf32>
      %cst_16 = arith.constant dense<0.000000e+00> : vector<192xf32>
      %25 = vector.multi_reduction <add>, %24, %cst_16 [1] : vector<192x128xf32> to vector<192xf32>
      %26 = vector.shape_cast %25 : vector<192xf32> to vector<192x1xf32>
      %cst_17 = arith.constant 1.000000e+00 : f32
      %27 = vector.broadcast %cst_17 : f32 to vector<192x1xf32>
      %28 = arith.addf %27, %26 : vector<192x1xf32>
      %29 = math.sqrt %28 : vector<192x1xf32>
      %c0_i32_18 = arith.constant 0 : i32
      %30 = vector.broadcast %c0_i32_18 : i32 to vector<192x128xi32>
      %31 = arith.cmpi eq, %19, %30 : vector<192x128xi32>
      %32 = vector.shape_cast %29 : vector<192x1xf32> to vector<192x1xf32>
      %33 = vector.broadcast %32 : vector<192x1xf32> to vector<192x128xf32>
      %34 = arith.select %31, %33, %18 : vector<192x128xi1>, vector<192x128xf32>
      %c0_19 = arith.constant 0 : index
      %c0_20 = arith.constant 0 : index
      %35 = vector.load %arg6[%c0_19, %c0_20] : memref<192x128xf32, #tpu.memory_space<vmem>>, vector<192x128xf32>
      tpu.vector_store %arg6[%c0_19, %c0_20], %34 {strides = array<i32>} : memref<192x128xf32, #tpu.memory_space<vmem>>, vector<192x128xf32>,
    } else {
    }
    return
  }
  func.func @transform_0(%arg0: i32, %arg1: i32) -> (i32, i32) {
    %c0_i32 = arith.constant 0 : i32
    %c0_i32_0 = arith.constant 0 : i32
    %c0_i32_1 = arith.constant 0 : i32
    return %c0_i32, %c0_i32_0 : i32, i32
  }
  func.func @transform_1(%arg0: i32, %arg1: i32) -> (i32, i32) {
    %c0_i32 = arith.constant 0 : i32
    %c0_i32_0 = arith.constant 0 : i32
    %c0_i32_1 = arith.constant 0 : i32
    return %c0_i32, %c0_i32_0 : i32, i32
  }
  func.func @transform_2(%arg0: i32, %arg1: i32) -> (i32, i32) {
    %c0_i32 = arith.constant 0 : i32
    return %arg0, %arg1 : i32, i32
  }
  func.func @transform_3(%arg0: i32, %arg1: i32) -> (i32, i32) {
    %c0_i32 = arith.constant 0 : i32
    %c0_i32_0 = arith.constant 0 : i32
    %c0_i32_1 = arith.constant 0 : i32
    return %c0_i32, %c0_i32_0 : i32, i32
  }
  func.func @transform_4(%arg0: i32, %arg1: i32) -> (i32, i32) {
    %c0_i32 = arith.constant 0 : i32
    %c0_i32_0 = arith.constant 0 : i32
    return %arg0, %c0_i32 : i32, i32
  }
}

</mosaic_0001>

<bundles_post_ra>
// kernel: hyperse_forward_padded.3
= control target key start
LH: loop header
LB: loop body
LE: loop exit
PB: predicated region body
PF: predicated region fallthrough
CT: control target
= control target key end

     0   :  { %9 = vsyncpa [#allocation4], 0  ;;  %s3124_s0 = inlined_call_operand.vmem [shape: bf16[384,128], index: 0, kind: input, shape index: {}]   ;;  %s3125_s1 = inlined_call_operand.vmem [shape: bf16[128,128], index: 1, kind: input, shape index: {}]   ;;  %s3126_s2 = inlined_call_operand.vmem [shape: bf16[384,384], index: 2, kind: input, shape index: {}]   ;;  %s3127_s3 = inlined_call_operand.vmem [shape: f32[1,128], index: 3, kind: input, shape index: {}]   ;;  %s3128_s4 = inlined_call_operand.hbm [shape: f32[384,128], index: 4, kind: output, shape index: {}]  }
   0x1   :  { %11 = vsyncpa [#allocation4 + $0x1], 0  ;;  %s2436_s15 = smov 0   ;;  %s2438_s16 = smov 0  }
   0x2   :  { %s2440_s17 = smov 0   ;;  %s2442_s18 = smov 0  }
   0x3   :  { %s2444_s19 = smov 0   ;;  %s2446_s20 = smov 0  }
   0x4 LB: > { %s1804_s21 = sadd.s32 4294967295, %s2406_s20   ;;  %s1805_s22 = sadd.s32 4294967294, %s2406_s20   ;;  %s2406_s20 = sphi %s2446_s20, %s17_s20   ;;  %s2402_s19 = sphi %s2444_s19, %s3135_s19   ;;  %s2398_s18 = sphi %s2442_s18, %s3134_s18   ;;  %s2394_s17 = sphi %s2440_s17, %s3133_s17   ;;  %s2390_s16 = sphi %s2438_s16, %s3132_s16   ;;  %s2386_s15 = sphi %s2436_s15, %s3131_s15  }
   0x5   : > { %s29_s23 = sadd.s32 1, %s2402_s19  ;;  %s127_s24 = sadd.s32 1, %s2394_s17 }
   0x6   : > { %p31_p0 = scmp.ge.s32.totalorder %s29_s23, 2  ;;  %p137_p1 = scmp.ne.s32.totalorder %s2394_s17, %s2390_s16 }
   0x7   : > { %p138_p2 = scmp.eq.s32.totalorder %s1804_s21, 1  ;;  %p143_p3 = scmp.ne.s32.totalorder %s2390_s16, %s2386_s15 }
   0x8   : > { %s3137_s23 = smov (%p31_p0, %s29_s23), 0  ;;  %p144_p5 = scmp.eq.s32.totalorder %s1805_s22, 1 }
   0x9   : > { %p2476_p4 = por %p138_p2, %p137_p1  ;;  %s124_s26 = ssub.s32 %s2402_s19, %s3137_s23 }
   0xa   : > { %p1808_p6 = scmp.ge.s32.totalorder %s2406_s20, 1  ;;  %p125_p7 = scmp.eq.s32.totalorder %s124_s26, 0 }
   0xb   : > { %p2483_p8 = por %p144_p5, %p143_p3  ;;  %p186_p9 = scmp.lt.s32.totalorder %s2406_s20, 3 }
   0xc   : > { %s2489_s28 = scalar_select %p125_p7, %s2394_s17, %s127_s24  }
   0xd   : > { %p187_p10 = pnand %p1808_p6, %p186_p9 }
   0xe   : > { %s217_s29 = smul.u32 (!%p187_p10), 24, %s2398_s18  ;;  %s214_s10 = sand.u32 (!%p187_p10), 1, %s2390_s16  }
   0xf   : > { %190 = sbr.rel (%p187_p10) target bundleno = 835 (0x343), region = 36  ;;  %s3079_s24 = scalar_lea.sflag (!%p187_p10), [#allocation4], %s214_s10 }
  0x10   : > { %p219_p11 = scmp.lt.s32.totalorder (!%p187_p10), %s217_s29, 47  ;;  %s2143_s11 = smul.u32 (!%p187_p10), 192, %s214_s10 }
  0x11   : > { %s1882_s13 = smul.u32 (!%p187_p10), 3072, %s2398_s18 }
  0x12   : > { %s2846_s12 = scalar_lea.vmem (!%p187_p10), [#allocation3], %s2143_s11 }
  0x13   : > { %s1726_s14 = sshll.u32 (!%p187_p10), %s2846_s12, 4  ;;  %s3071_s22 = scalar_lea.hbm (!%p187_p10), %s3128_s4, %s1882_s13  ;;  %s3066_s14 = int_to_ptr.vmem [resolvable:$true] %s1726_s14 }
  0x14   : > { %v2202_v0 = vld [vmem:[%s3125_s1 + $0x38] sm:$0xff]   ;;  %v2203_v1 = vld [vmem:[%s3125_s1 + $0x30] sm:$0xff]   ;;  %v2204_v2 = vld [vmem:[%s3125_s1 + $0x28] sm:$0xff]   ;;  %s3139_s29 = smov (!%p219_p11, %s217_s29), 47  ;;  %s2330_s26 = scalar_lea.vmem %s3066_s14, 3072 }
  0x15   : > { %2023 = vmatprep.subr.bf16.mxu0 %v2202_v0  ;;  %v2205_v3 = vld [vmem:[%s3125_s1 + $0x20] sm:$0xff]   ;;  %v2206_v5 = vld [vmem:[%s3125_s1 + $0x18] sm:$0xff]   ;;  %v2207_v6 = vld [vmem:[%s3125_s1 + $0x10] sm:$0xff]   ;;  %s2144_s30 = smul.u32 12, %s3139_s29  ;;  %p2331_p12 = scmp.ne.s32.totalorder %s3066_s14, %s2330_s26 }
  0x16   : > { %2024 = vmatpush3.bf16.msra.mxu0 %v2202_v0  ;;  %v2210_v4 = vld [vmem:[%s3124_s0] sm:$0xff]   ;;  %v2208_v7 = vld [vmem:[%s3125_s1 + $0x8] sm:$0xff]   ;;  %v2212_v10 = vld [vmem:[%s3124_s0 + $0x10] sm:$0xff]   ;;  %s2408_s29 = smov [#allocation3]  }
  0x17   : > { %2025 = vmatprep.subr.bf16.mxu0 %v2203_v1  ;;  %2039 = vmatprep.mubr.bf16.mxu0 %v2210_v4  ;;  %v2209_v8 = vld [vmem:[%s3125_s1] sm:$0xff]   ;;  %v2211_v9 = vld [vmem:[%s3124_s0 + $0x8] sm:$0xff]   ;;  %v2213_v11 = vld [vmem:[%s3124_s0 + $0x18] sm:$0xff]   ;;  %s2591_s7 = scalar_lea.vmem %s3126_s2, %s2144_s30  ;;  %p2332_p13 = pnand %p2331_p12, %p2476_p4 }
  0x18   : > { %v2214_v12 = vld [vmem:[%s3124_s0 + $0x20] sm:$0xff]   ;;  %v2215_v13 = vld [vmem:[%s3124_s0 + $0x28] sm:$0xff]   ;;  %v2216_v14 = vld [vmem:[%s3124_s0 + $0x30] sm:$0xff]   ;;  %s2334_s30 = sshll.u32 %s2408_s29, 4  ;;  %s2335_s30 = int_to_ptr.vmem [resolvable:$false] %s2334_s30 }
  0x19   : > { %v2217_v15 = vld [vmem:[%s3124_s0 + $0x38] sm:$0xff]   ;;  %v2218_v16 = vld [vmem:[%s3124_s0 + $0x40] sm:$0xff]   ;;  %v2219_v17 = vld [vmem:[%s3124_s0 + $0x48] sm:$0xff]   ;;  %p2333_p0 = pneg %p2332_p13  ;;  %s2336_s5 = scalar_lea.vmem %s2335_s30, 6144 }
  0x1a   : > { %2026 = vmatpush3.bf16.msra.mxu0 %v2203_v1  ;;  %v2220_v18 = vld [vmem:[%s3124_s0 + $0x50] sm:$0xff]   ;;  %v2221_v19 = vld [vmem:[%s3124_s0 + $0x58] sm:$0xff]   ;;  %v2222_v20 = vld [vmem:[%s3124_s0 + $0x60] sm:$0xff]   ;;  %p2337_p1 = scmp.lt.s32.totalorder %s3066_s14, %s2335_s30  ;;  %p2338_p2 = scmp.lt.s32.totalorder %s2336_s5, %s2330_s26 }
  0x1b   : > { %2027 = vmatprep.subr.bf16.mxu0 %v2204_v2  ;;  %v2223_v21 = vld [vmem:[%s3124_s0 + $0x68] sm:$0xff]   ;;  %v2224_v22 = vld [vmem:[%s3124_s0 + $0x70] sm:$0xff]   ;;  %v2225_v23 = vld [vmem:[%s3124_s0 + $0x78] sm:$0xff]  }
  0x1c   : > { %v2226_v24 = vld [vmem:[%s3124_s0 + $0x80] sm:$0xff]   ;;  %v2227_v25 = vld [vmem:[%s3124_s0 + $0x88] sm:$0xff]   ;;  %v2228_v26 = vld [vmem:[%s3124_s0 + $0x90] sm:$0xff]   ;;  %p2339_p3 = por %p2338_p2, %p2337_p1 }
  0x1d   : > { %v2229_v27 = vld [vmem:[%s3124_s0 + $0x98] sm:$0xff]   ;;  %v2230_v28 = vld [vmem:[%s3124_s0 + $0xa0] sm:$0xff]   ;;  %v2231_v29 = vld [vmem:[%s3124_s0 + $0xa8] sm:$0xff]  }
  0x1e   : > { %2028 = vmatpush3.bf16.msra.mxu0 %v2204_v2  ;;  %v2232_v30 = vld [vmem:[%s3124_s0 + $0xb0] sm:$0xff]   ;;  %v2233_v31 = vld [vmem:[%s3124_s0 + $0xb8] sm:$0xff]   ;;  %p2340_p5 = pnand %p2339_p3, %p2333_p0 }
  0x1f   : > { %2029 = vmatprep.subr.bf16.mxu0 %v2205_v3  ;;  %v2236_v32 = vld [vmem:[%s2591_s7 + $0x4] ss:$12 sps:$4 sm:$0xff]   ;;  %v2248_v33 = vld [vmem:[%s2591_s7 + $0x8] ss:$12 sps:$4 sm:$0xff]  }
  0x20   : > { %1072 = vmatprep.mubr.bf16.mxu1 %v2236_v32  ;;  %v2234_v32 = vld [vmem:[%s2591_s7] ss:$12 sps:$4 sm:$0xff]  }
  0x22   : > { %2030 = vmatpush3.bf16.msra.mxu0 %v2205_v3 }
  0x23   : > { %2031 = vmatprep.subr.bf16.mxu0 %v2206_v5 }
  0x26   : > { %2032 = vmatpush3.bf16.msra.mxu0 %v2206_v5 }
  0x27   : > { %2033 = vmatprep.subr.bf16.mxu0 %v2207_v6 }
  0x2a   : > { %2034 = vmatpush3.bf16.msra.mxu0 %v2207_v6 }
  0x2b   : > { %2035 = vmatprep.subr.bf16.mxu0 %v2208_v7 }
  0x2e   : > { %2036 = vmatpush3.bf16.msra.mxu0 %v2208_v7 }
  0x2f   : > { %2037 = vmatprep.subr.bf16.mxu0 %v2209_v8 }
  0x32   : > { %2038 = vmatpush3.bf16.msra.mxu0 %v2209_v8 }
  0x35   : > { %2040 = vmatmul.mubr.bf16.vlgmr.msra.gmra.mxu0 %v2211_v9 }
  0x36   : > { %2043 = vmatprep.mubr.bf16.mxu0 %v2212_v10 }
  0x3d   : > { %2044 = vmatmul.mubr.bf16.gmra.mxu0 %v2213_v11 }
  0x3e   : > { %2047 = vmatprep.mubr.bf16.mxu0 %v2214_v12 }
  0x45   : > { %2048 = vmatmul.mubr.bf16.gmra.mxu0 %v2215_v13 }
  0x46   : > { %2051 = vmatprep.mubr.bf16.mxu0 %v2216_v14 }
  0x4d   : > { %2052 = vmatmul.mubr.bf16.gmra.mxu0 %v2217_v15 }
  0x4e   : > { %2055 = vmatprep.mubr.bf16.mxu0 %v2218_v16 }
  0x55   : > { %2056 = vmatmul.mubr.bf16.gmra.mxu0 %v2219_v17 }
  0x56   : > { %2059 = vmatprep.mubr.bf16.mxu0 %v2220_v18 }
  0x5d   : > { %2060 = vmatmul.mubr.bf16.gmra.mxu0 %v2221_v19 }
  0x5e   : > { %2063 = vmatprep.mubr.bf16.mxu0 %v2222_v20 }
  0x65   : > { %2064 = vmatmul.mubr.bf16.gmra.mxu0 %v2223_v21 }
  0x66   : > { %2067 = vmatprep.mubr.bf16.mxu0 %v2224_v22 }
  0x6d   : > { %2068 = vmatmul.mubr.bf16.gmra.mxu0 %v2225_v23 }
  0x6e   : > { %2071 = vmatprep.mubr.bf16.mxu0 %v2226_v24 }
  0x75   : > { %2072 = vmatmul.mubr.bf16.gmra.mxu0 %v2227_v25 }
  0x76   : > { %2075 = vmatprep.mubr.bf16.mxu0 %v2228_v26 }
  0x7d   : > { %2076 = vmatmul.mubr.bf16.gmra.mxu0 %v2229_v27 }
  0x7e   : > { %2079 = vmatprep.mubr.bf16.mxu0 %v2230_v28 }
  0x85   : > { %2080 = vmatmul.mubr.bf16.gmra.mxu0 %v2231_v29 }
  0x86   : > { %2083 = vmatprep.mubr.bf16.mxu0 %v2232_v30 }
  0x8d   : > { %2084 = vmatmul.mubr.bf16.gmra.mxu0 %v2233_v31 }
  0x8e   : > { %2103 = vmatprep.mubr.bf16.mxu0 %v2248_v33 }
  0xf5   : > { %v2595_v34 = vpop.f32.mrf.mxu0 }
  0xf7   : > { %v2597_v35 = vpop.f32.mrf.mxu0 }
  0xf9   : > { %v2599_v36 = vpop.f32.mrf.mxu0 }
  0xfa   : > { %v825_v37 = vpack.c.bf16 %v2599_v36, %v2595_v34  ;;  %v2239_v36 = vld [vmem:[%s2591_s7 + $0x18] ss:$12 sps:$4 sm:$0xff]  }
  0xfb   : > { %v2603_v38 = vpop.f32.mrf.mxu0 }
  0xfc   : > { %v824_v39 = vpack.c.bf16 %v2603_v38, %v2597_v35  ;;  %v2240_v35 = vld [vmem:[%s2591_s7 + $0x34] ss:$12 sps:$4 sm:$0xff]  }
  0xfd   : > { %v2045_v40 = vpop.f32.mrf.mxu0 }
  0xff   : > { %v577_v41 = vpop.f32.mrf.mxu0 }
 0x101   : > { %v2046_v42 = vpop.f32.mrf.mxu0 }
 0x102   : > { %v827_v43 = vpack.c.bf16 %v2046_v42, %v2045_v40  ;;  %v2237_v42 = vld [vmem:[%s2591_s7 + $0x1c] ss:$12 sps:$4 sm:$0xff]  }
 0x103   : > { %v580_v44 = vpop.f32.mrf.mxu0 }
 0x104   : > { %v826_v45 = vpack.c.bf16 %v580_v44, %v577_v41  ;;  %v2243_v44 = vld [vmem:[%s2591_s7 + $0x4c] ss:$12 sps:$4 sm:$0xff]  }
 0x105   : > { %v2049_v46 = vpop.f32.mrf.mxu0 }
 0x107   : > { %v593_v47 = vpop.f32.mrf.mxu0 }
 0x109   : > { %v2050_v48 = vpop.f32.mrf.mxu0 }
 0x10a   : > { %v829_v14 = vpack.c.bf16 %v2050_v48, %v2049_v46  ;;  %v2246_v48 = vld [vmem:[%s2591_s7 + $0x64] ss:$12 sps:$4 sm:$0xff]  }
 0x10b   : > { %v596_v49 = vpop.f32.mrf.mxu0 }
 0x10c   : > { %v828_v18 = vpack.c.bf16 %v596_v49, %v593_v47  ;;  %v2245_v47 = vld [vmem:[%s2591_s7 + $0x48] ss:$12 sps:$4 sm:$0xff]  }
 0x10d   : > { %v2053_v50 = vpop.f32.mrf.mxu0 }
 0x10f   : > { %v609_v51 = vpop.f32.mrf.mxu0 }
 0x111   : > { %v2054_v52 = vpop.f32.mrf.mxu0 }
 0x112   : > { %v831_v6 = vpack.c.bf16 %v2054_v52, %v2053_v50  ;;  %v2249_v50 = vld [vmem:[%s2591_s7 + $0x60] ss:$12 sps:$4 sm:$0xff]   ;;  %v2251_v52 = vld [vmem:[%s2591_s7 + $0x7c] ss:$12 sps:$4 sm:$0xff]  }
 0x113   : > { %v612_v53 = vpop.f32.mrf.mxu0 }
 0x114   : > { %v830_v10 = vpack.c.bf16 %v612_v53, %v609_v51  ;;  %v2250_v51 = vld [vmem:[%s2591_s7 + $0x20] ss:$12 sps:$4 sm:$0xff]   ;;  %v2253_v53 = vld [vmem:[%s2591_s7 + $0x38] ss:$12 sps:$4 sm:$0xff]  }
 0x115   : > { %v2057_v54 = vpop.f32.mrf.mxu0 }
 0x117   : > { %v625_v55 = vpop.f32.mrf.mxu0 }
 0x119   : > { %v2058_v56 = vpop.f32.mrf.mxu0 }
 0x11a   : > { %v833_v26 = vpack.c.bf16 %v2058_v56, %v2057_v54  ;;  %v2254_v54 = vld [vmem:[%s2591_s7 + $0x78] ss:$12 sps:$4 sm:$0xff]   ;;  %v2256_v56 = vld [vmem:[%s2591_s7 + $0x94] ss:$12 sps:$4 sm:$0xff]  }
 0x11b   : > { %v628_v57 = vpop.f32.mrf.mxu0 }
 0x11c   : > { %v832_v29 = vpack.c.bf16 %v628_v57, %v625_v55  ;;  %v2255_v55 = vld [vmem:[%s2591_s7 + $0x50] ss:$12 sps:$4 sm:$0xff]   ;;  %v2258_v57 = vld [vmem:[%s2591_s7 + $0x68] ss:$12 sps:$4 sm:$0xff]  }
 0x11d   : > { %v2061_v58 = vpop.f32.mrf.mxu0 }
 0x11f   : > { %v641_v59 = vpop.f32.mrf.mxu0 }
 0x121   : > { %v2062_v60 = vpop.f32.mrf.mxu0 }
 0x122   : > { %v835_v20 = vpack.c.bf16 %v2062_v60, %v2061_v58  ;;  %v2259_v58 = vld [vmem:[%s2591_s7 + $0x90] ss:$12 sps:$4 sm:$0xff]   ;;  %v2261_v60 = vld [vmem:[%s2591_s7 + $0xac] ss:$12 sps:$4 sm:$0xff]  }
 0x123   : > { %v644_v61 = vpop.f32.mrf.mxu0 }
 0x124   : > { %v834_v23 = vpack.c.bf16 %v644_v61, %v641_v59  ;;  %v2260_v59 = vld [vmem:[%s2591_s7 + $0x80] ss:$12 sps:$4 sm:$0xff]   ;;  %v2263_v61 = vld [vmem:[%s2591_s7 + $0xa8] ss:$12 sps:$4 sm:$0xff]  }
 0x125   : > { %v2065_v62 = vpop.f32.mrf.mxu0 }
 0x127   : > { %v657_v63 = vpop.f32.mrf.mxu0 }
 0x129   : > { %v2066_v0 = vpop.f32.mrf.mxu0 }
 0x12a   : > { %v837_v12 = vpack.c.bf16 %v2066_v0, %v2065_v62  ;;  %v2264_v62 = vld [vmem:[%s2591_s7 + $0xc4] ss:$12 sps:$4 sm:$0xff]   ;;  %v2267_v0 = vld [vmem:[%s2591_s7 + $0xdc] ss:$12 sps:$4 sm:$0xff]  }
 0x12b   : > { %v660_v1 = vpop.f32.mrf.mxu0 }
 0x12c   : > { %v836_v16 = vpack.c.bf16 %v660_v1, %v657_v63  ;;  %v2266_v63 = vld [vmem:[%s2591_s7 + $0xc0] ss:$12 sps:$4 sm:$0xff]   ;;  %v2269_v1 = vld [vmem:[%s2591_s7 + $0xd8] ss:$12 sps:$4 sm:$0xff]  }
 0x12d   : > { %v2069_v2 = vpop.f32.mrf.mxu0 }
 0x12f   : > { %v673_v3 = vpop.f32.mrf.mxu0 }
 0x131   : > { %v2070_v4 = vpop.f32.mrf.mxu0 }
 0x132   : > { %v839_v5 = vpack.c.bf16 %v2070_v4, %v2069_v2  ;;  %v2270_v2 = vld [vmem:[%s2591_s7 + $0xf4] ss:$12 sps:$4 sm:$0xff]   ;;  %v2273_v4 = vld [vmem:[%s2591_s7 + $0x10c] ss:$12 sps:$4 sm:$0xff]  }
 0x133   : > { %v676_v7 = vpop.f32.mrf.mxu0 }
 0x134   : > { %v838_v8 = vpack.c.bf16 %v676_v7, %v673_v3  ;;  %1915 = vmatprep.subr.bf16.mxu1 %v839_v5  ;;  %v2272_v3 = vld [vmem:[%s2591_s7 + $0xf0] ss:$12 sps:$4 sm:$0xff]   ;;  %v2275_v5 = vld [vmem:[%s2591_s7 + $0x108] ss:$12 sps:$4 sm:$0xff]  }
 0x135   : > { %v2607_v9 = vpop.f32.mrf.mxu0  ;;  %1916 = vmatpush3.bf16.msra.mxu1 %v831_v6  ;;  %v2276_v6 = vld [vmem:[%s2591_s7 + $0x98] ss:$12 sps:$4 sm:$0xff]   ;;  %v2277_v7 = vld [vmem:[%s2591_s7 + $0xb0] ss:$12 sps:$4 sm:$0xff]  }
 0x136   : > { %1917 = vmatprep.subr.bf16.mxu1 %v838_v8  ;;  %v2278_v8 = vld [vmem:[%s2591_s7 + $0xc8] ss:$12 sps:$4 sm:$0xff]  }
 0x137   : > { %v2609_v11 = vpop.f32.mrf.mxu0 }
 0x139   : > { %v2611_v13 = vpop.f32.mrf.mxu0  ;;  %1918 = vmatpush3.bf16.msra.mxu1 %v830_v10  ;;  %v2280_v10 = vld [vmem:[%s2591_s7 + $0xf8] ss:$12 sps:$4 sm:$0xff]  }
 0x13a   : > { %1919 = vmatprep.subr.bf16.mxu1 %v837_v12  ;;  %v841_v46 = vpack.c.bf16 %v2611_v13, %v2607_v9  ;;  %v2279_v9 = vld [vmem:[%s2591_s7 + $0xe0] ss:$12 sps:$4 sm:$0xff]  }
 0x13b   : > { %v2613_v15 = vpop.f32.mrf.mxu0 }
 0x13c   : > { %v840_v49 = vpack.c.bf16 %v2613_v15, %v2609_v11  ;;  %v2281_v11 = vld [vmem:[%s2591_s7 + $0x110] ss:$12 sps:$4 sm:$0xff]  }
 0x13d   : > { %v2077_v17 = vpop.f32.mrf.mxu0  ;;  %1920 = vmatpush3.bf16.msra.mxu1 %v829_v14 }
 0x13e   : > { %1921 = vmatprep.subr.bf16.mxu1 %v836_v16 }
 0x13f   : > { %v705_v19 = vpop.f32.mrf.mxu0 }
 0x141   : > { %v2078_v21 = vpop.f32.mrf.mxu0  ;;  %1922 = vmatpush3.bf16.msra.mxu1 %v828_v18 }
 0x142   : > { %1923 = vmatprep.subr.bf16.mxu1 %v835_v20  ;;  %v843_v38 = vpack.c.bf16 %v2078_v21, %v2077_v17 }
 0x143   : > { %v708_v22 = vpop.f32.mrf.mxu0 }
 0x145   : > { %v2081_v24 = vpop.f32.mrf.mxu0  ;;  %1924 = vmatpush3.bf16.msra.mxu1 %v827_v43 }
 0x146   : > { %1925 = vmatprep.subr.bf16.mxu1 %v834_v23 }
 0x147   : > { %v721_v25 = vpop.f32.mrf.mxu0 }
 0x149   : > { %v2082_v27 = vpop.f32.mrf.mxu0  ;;  %1926 = vmatpush3.bf16.msra.mxu1 %v826_v45  ;;  %v842_v45 = vpack.c.bf16 %v708_v22, %v705_v19 }
 0x14a   : > { %1927 = vmatprep.subr.bf16.mxu1 %v833_v26  ;;  %v845_v34 = vpack.c.bf16 %v2082_v27, %v2081_v24  ;;  %v1373_v26 = vlaneseq }
 0x14b   : > { %v724_v28 = vpop.f32.mrf.mxu0 }
 0x14d   : > { %v2085_v30 = vpop.f32.mrf.mxu0  ;;  %1928 = vmatpush3.bf16.msra.mxu1 %v825_v37  ;;  %v844_v37 = vpack.c.bf16 %v724_v28, %v721_v25 }
 0x14e   : > { %1929 = vmatprep.subr.bf16.mxu1 %v832_v29  ;;  %v2659_v29 = vand.u32 127, %v1373_v26 }
 0x14f   : > { %v737_v31 = vpop.f32.mrf.mxu0 }
 0x150   : > { %vm1375_vm0 = vcmp.eq.s32.totalorder %v2659_v29, 0 }
 0x151   : > { %v2086_v33 = vpop.f32.mrf.mxu0  ;;  %1930 = vmatpush3.bf16.msra.mxu1 %v824_v39  ;;  %v2242_v39 = vld [vmem:[%s2591_s7 + $0x30] ss:$12 sps:$4 sm:$0xff]  }
 0x152   : > { %v847_v40 = vpack.c.bf16 %v2086_v33, %v2085_v30  ;;  %v2664_v33 = vld [vmem:[%s3127_s3] ss:$0 sm:$0xff] }
 0x153   : > { %v740_v41 = vpop.f32.mrf.mxu0 }
 0x154   : > { %v846_v43 = vpack.c.bf16 %v740_v41, %v737_v31  ;;  %1073 = vmatmul.mubr.bf16.vlgmr.msra.gmra.mxu1 %v2234_v32  ;;  %2087 = vmatprep.subr.bf16.mxu0 %v847_v40 }
 0x155   : > { %2127 = vmatprep.subr.bf16.mxu1 %v847_v40  ;;  %2088 = vmatpush3.bf16.msra.mxu0 %v847_v40 }
 0x156   : > { %2135 = vmatpush3.bf16.msra.mxu1 %v847_v40  ;;  %2089 = vmatprep.subr.bf16.mxu0 %v846_v43 }
 0x157   : > { %2128 = vmatprep.subr.bf16.mxu1 %v846_v43  ;;  %1080 = vmatprep.mubr.bf16.mxu1 %v2237_v42 }
 0x159   : > { %2090 = vmatpush3.bf16.msra.mxu0 %v846_v43 }
 0x15a   : > { %2136 = vmatpush3.bf16.msra.mxu1 %v846_v43  ;;  %2091 = vmatprep.subr.bf16.mxu0 %v845_v34 }
 0x15b   : > { %2129 = vmatprep.subr.bf16.mxu1 %v845_v34 }
 0x15c   : > { %1081 = vmatmul.mubr.bf16.gmra.mxu1 %v2239_v36 }
 0x15d   : > { %2092 = vmatpush3.bf16.msra.mxu0 %v845_v34  ;;  %1088 = vmatprep.mubr.bf16.mxu1 %v2240_v35 }
 0x15e   : > { %2137 = vmatpush3.bf16.msra.mxu1 %v845_v34  ;;  %2093 = vmatprep.subr.bf16.mxu0 %v844_v37 }
 0x15f   : > { %2130 = vmatprep.subr.bf16.mxu1 %v844_v37 }
 0x161   : > { %2094 = vmatpush3.bf16.msra.mxu0 %v844_v37 }
 0x162   : > { %2138 = vmatpush3.bf16.msra.mxu1 %v844_v37  ;;  %2095 = vmatprep.subr.bf16.mxu0 %v843_v38 }
 0x163   : > { %2131 = vmatprep.subr.bf16.mxu1 %v843_v38 }
 0x164   : > { %1089 = vmatmul.mubr.bf16.gmra.mxu1 %v2242_v39 }
 0x165   : > { %2096 = vmatpush3.bf16.msra.mxu0 %v843_v38  ;;  %1096 = vmatprep.mubr.bf16.mxu1 %v2243_v44 }
 0x166   : > { %2139 = vmatpush3.bf16.msra.mxu1 %v843_v38  ;;  %2097 = vmatprep.subr.bf16.mxu0 %v842_v45 }
 0x167   : > { %2132 = vmatprep.subr.bf16.mxu1 %v842_v45 }
 0x169   : > { %2098 = vmatpush3.bf16.msra.mxu0 %v842_v45 }
 0x16a   : > { %2140 = vmatpush3.bf16.msra.mxu1 %v842_v45  ;;  %2099 = vmatprep.subr.bf16.mxu0 %v841_v46 }
 0x16b   : > { %2133 = vmatprep.subr.bf16.mxu1 %v841_v46 }
 0x16c   : > { %1097 = vmatmul.mubr.bf16.gmra.mxu1 %v2245_v47 }
 0x16d   : > { %2100 = vmatpush3.bf16.msra.mxu0 %v841_v46  ;;  %1104 = vmatprep.mubr.bf16.mxu1 %v2246_v48 }
 0x16e   : > { %2141 = vmatpush3.bf16.msra.mxu1 %v841_v46  ;;  %2101 = vmatprep.subr.bf16.mxu0 %v840_v49 }
 0x16f   : > { %2134 = vmatprep.subr.bf16.mxu1 %v840_v49 }
 0x171   : > { %2102 = vmatpush3.bf16.msra.mxu0 %v840_v49 }
 0x172   : > { %2142 = vmatpush3.bf16.msra.mxu1 %v840_v49 }
 0x174   : > { %1105 = vmatmul.mubr.bf16.gmra.mxu1 %v2249_v50  ;;  %2104 = vmatmul.mubr.bf16.vlgmr.msra.gmra.mxu0 %v2250_v51 }
 0x175   : > { %1112 = vmatprep.mubr.bf16.mxu1 %v2251_v52  ;;  %2107 = vmatprep.mubr.bf16.mxu0 %v2253_v53 }
 0x17c   : > { %1113 = vmatmul.mubr.bf16.gmra.mxu1 %v2254_v54  ;;  %2108 = vmatmul.mubr.bf16.gmra.mxu0 %v2255_v55 }
 0x17d   : > { %1120 = vmatprep.mubr.bf16.mxu1 %v2256_v56  ;;  %2111 = vmatprep.mubr.bf16.mxu0 %v2258_v57 }
 0x184   : > { %1121 = vmatmul.mubr.bf16.gmra.mxu1 %v2259_v58  ;;  %2112 = vmatmul.mubr.bf16.gmra.mxu0 %v2260_v59 }
 0x185   : > { %1128 = vmatprep.mubr.bf16.mxu1 %v2261_v60 }
 0x18c   : > { %1129 = vmatmul.mubr.bf16.gmra.mxu1 %v2263_v61 }
 0x18d   : > { %1136 = vmatprep.mubr.bf16.mxu1 %v2264_v62 }
 0x194   : > { %1137 = vmatmul.mubr.bf16.gmra.mxu1 %v2266_v63 }
 0x195   : > { %1144 = vmatprep.mubr.bf16.mxu1 %v2267_v0 }
 0x19c   : > { %1145 = vmatmul.mubr.bf16.gmra.mxu1 %v2269_v1 }
 0x19d   : > { %1152 = vmatprep.mubr.bf16.mxu1 %v2270_v2 }
 0x1a4   : > { %1153 = vmatmul.mubr.bf16.gmra.mxu1 %v2272_v3 }
 0x1a5   : > { %1160 = vmatprep.mubr.bf16.mxu1 %v2273_v4 }
 0x1ac   : > { %1161 = vmatmul.mubr.bf16.gmra.mxu1 %v2275_v5 }
 0x1ad   : > { %2115 = vmatprep.mubr.bf16.mxu1 %v2276_v6 }
 0x1b4   : > { %2116 = vmatmul.mubr.bf16.vlgmr.msra.gmra.mxu1 %v2277_v7 }
 0x1b5   : > { %2119 = vmatprep.mubr.bf16.mxu1 %v2278_v8 }
 0x1bc   : > { %2120 = vmatmul.mubr.bf16.gmra.mxu1 %v2279_v9 }
 0x1bd   : > { %2123 = vmatprep.mubr.bf16.mxu1 %v2280_v10 }
 0x1c4   : > { %2124 = vmatmul.mubr.bf16.gmra.mxu1 %v2281_v11 }
 0x214   : > { %v1931_v12 = vpop.f32.mrf.mxu1 }
 0x216   : > { %v1932_v13 = vpop.f32.mrf.mxu1 }
 0x217   : > { %v1933_v40 = vadd.f32 %v1932_v13, %v1931_v12 }
 0x218   : > { %v1934_v14 = vpop.f32.mrf.mxu1 }
 0x21a   : > { %v1935_v15 = vpop.f32.mrf.mxu1 }
 0x21b   : > { %v1936_v39 = vadd.f32 %v1935_v15, %v1934_v14 }
 0x21c   : > { %v1937_v16 = vpop.f32.mrf.mxu1 }
 0x21e   : > { %v1938_v17 = vpop.f32.mrf.mxu1 }
 0x21f   : > { %v1939_v30 = vadd.f32 %v1938_v17, %v1937_v16 }
 0x220   : > { %v1940_v18 = vpop.f32.mrf.mxu1 }
 0x222   : > { %v1941_v19 = vpop.f32.mrf.mxu1 }
 0x223   : > { %v1942_v34 = vadd.f32 %v1941_v19, %v1940_v18 }
 0x224   : > { %v1943_v20 = vpop.f32.mrf.mxu1 }
 0x226   : > { %v1944_v21 = vpop.f32.mrf.mxu1 }
 0x227   : > { %v1945_v57 = vadd.f32 %v1944_v21, %v1943_v20 }
 0x228   : > { %v1946_v22 = vpop.f32.mrf.mxu1 }
 0x22a   : > { %v1947_v23 = vpop.f32.mrf.mxu1 }
 0x22b   : > { %v1948_v7 = vadd.f32 %v1947_v23, %v1946_v22 }
 0x22c   : > { %v1949_v24 = vpop.f32.mrf.mxu1 }
 0x22e   : > { %v1950_v25 = vpop.f32.mrf.mxu1 }
 0x22f   : > { %v1951_v50 = vadd.f32 %v1950_v25, %v1949_v24 }
 0x230   : > { %v1952_v27 = vpop.f32.mrf.mxu1 }
 0x232   : > { %v1953_v28 = vpop.f32.mrf.mxu1 }
 0x233   : > { %v1954_v0 = vadd.f32 %v1953_v28, %v1952_v27 }
 0x234   : > { %v1955_v31 = vpop.f32.mrf.mxu1  ;;  %v2105_v32 = vpop.f32.mrf.mxu0 }
 0x235   : > { %v1212_v41 = vadd.f32 %v2105_v32, %v1939_v30 }
 0x236   : > { %v1956_v42 = vpop.f32.mrf.mxu1  ;;  %v1203_v43 = vpop.f32.mrf.mxu0 }
 0x237   : > { %v1204_v36 = vadd.f32 %v1933_v40, %v1203_v43  ;;  %v2668_v35 = vadd.f32 %v2664_v33, %v1212_v41  ;;  %v1957_v16 = vadd.f32 %v1956_v42, %v1955_v31 }
 0x238   : > { %v2670_v37 = vpop.f32.mrf.mxu1  ;;  %v2106_v38 = vpop.f32.mrf.mxu0 }
 0x239   : > { %v1215_v44 = vadd.f32 %v2106_v38, %v1942_v34  ;;  %v1378_v45 = vsel %vm1375_vm0, 0.0, %v2668_v35  ;;  %v2676_v46 = vadd.f32 %v2664_v33, %v1204_v36 }
 0x23a   : > { %v1959_v47 = vpop.f32.mrf.mxu1  ;;  %v1206_v48 = vpop.f32.mrf.mxu0  ;;  %v1402_v49 = vmul.f32 %v1378_v45, %v1378_v45 }
 0x23b   : > { %v2679_v51 = vadd.f32 %v2664_v33, %v1215_v44  ;;  %v1207_v52 = vadd.f32 %v1936_v39, %v1206_v48  ;;  %v1376_v53 = vsel %vm1375_vm0, 0.0, %v2676_v46  ;;  %v1960_v42 = vadd.f32 %v1959_v47, %v2670_v37 }
 0x23c   : > { %v1961_v54 = vpop.f32.mrf.mxu1  ;;  %v2109_v55 = vpop.f32.mrf.mxu0  ;;  %1428 = vadd.xlane.f32.xlu1 %v1402_v49  ;;  %v1400_v56 = vmul.f32 %v1376_v53, %v1376_v53 }
 0x23d   : > { %v2685_v58 = vadd.f32 %v2664_v33, %v1207_v52  ;;  %v1228_v59 = vadd.f32 %v2109_v55, %v1951_v50  ;;  %v1379_v60 = vsel %vm1375_vm0, 0.0, %v2679_v51 }
 0x23e   : > { %v1962_v61 = vpop.f32.mrf.mxu1  ;;  %v1219_v62 = vpop.f32.mrf.mxu0  ;;  %1424 = vadd.xlane.f32.xlu0 %v1400_v56  ;;  %v1403_v63 = vmul.f32 %v1379_v60, %v1379_v60 }
 0x23f   : > { %v2691_v1 = vadd.f32 %v2664_v33, %v1228_v59  ;;  %v1220_v2 = vadd.f32 %v1945_v57, %v1219_v62  ;;  %v1377_v3 = vsel %vm1375_vm0, 0.0, %v2685_v58  ;;  %v1963_v13 = vadd.f32 %v1962_v61, %v1961_v54 }
 0x240   : > { %v1964_v4 = vpop.f32.mrf.mxu1  ;;  %v2110_v5 = vpop.f32.mrf.mxu0  ;;  %1430 = vadd.xlane.f32.xlu1 %v1403_v63  ;;  %v1401_v6 = vmul.f32 %v1377_v3, %v1377_v3 }
 0x241   : > { %v2697_v8 = vadd.f32 %v2664_v33, %v1220_v2  ;;  %v1231_v9 = vadd.f32 %v2110_v5, %v1954_v0  ;;  %v1382_v10 = vsel %vm1375_vm0, 0.0, %v2691_v1 }
 0x242   : > { %v1965_v11 = vpop.f32.mrf.mxu1  ;;  %v1222_v12 = vpop.f32.mrf.mxu0  ;;  %1426 = vadd.xlane.f32.xlu0 %v1401_v6  ;;  %v1406_v19 = vmul.f32 %v1382_v10, %v1382_v10 }
 0x243   : > { %v2703_v14 = vadd.f32 %v2664_v33, %v1231_v9  ;;  %v1223_v15 = vadd.f32 %v1948_v7, %v1222_v12  ;;  %v1380_v23 = vsel %vm1375_vm0, 0.0, %v2697_v8  ;;  %v1966_v27 = vadd.f32 %v1965_v11, %v1964_v4 }
 0x244   : > { %v2705_v17 = vpop.f32.mrf.mxu1  ;;  %v2113_v18 = vpop.f32.mrf.mxu0  ;;  %v1404_v41 = vmul.f32 %v1380_v23, %v1380_v23 }
 0x245   : > { %v2708_v20 = vadd.f32 %v2664_v33, %v1223_v15  ;;  %v1244_v21 = vadd.f32 %v2113_v18, %v1963_v13  ;;  %v1383_v22 = vsel %vm1375_vm0, 0.0, %v2703_v14 }
 0x246   : > { %v1968_v24 = vpop.f32.mrf.mxu1  ;;  %v1235_v25 = vpop.f32.mrf.mxu0  ;;  %1436 = vadd.xlane.f32.xlu0 %v1406_v19  ;;  %v1407_v26 = vmul.f32 %v1383_v22, %v1383_v22 }
 0x247   : > { %v2717_v28 = vadd.f32 %v2664_v33, %v1244_v21  ;;  %v1236_v30 = vadd.f32 %v1957_v16, %v1235_v25  ;;  %v1381_v31 = vsel %vm1375_vm0, 0.0, %v2708_v20  ;;  %v1969_v19 = vadd.f32 %v1968_v24, %v2705_v17 }
 0x248   : > { %v1970_v32 = vpop.f32.mrf.mxu1  ;;  %v2114_v40 = vpop.f32.mrf.mxu0  ;;  %1438 = vadd.xlane.f32.xlu1 %v1407_v26  ;;  %v1405_v44 = vmul.f32 %v1381_v31, %v1381_v31 }
 0x249   : > { %v2724_v43 = vadd.f32 %v2664_v33, %v1236_v30  ;;  %v1247_v34 = vadd.f32 %v2114_v40, %v1966_v27  ;;  %v1386_v36 = vsel %vm1375_vm0, 0.0, %v2717_v28 }
 0x24a   : > { %v1971_v38 = vpop.f32.mrf.mxu1  ;;  %1432 = vadd.xlane.f32.xlu0 %v1404_v41  ;;  %v1238_v39 = vpop.f32.mrf.mxu0  ;;  %v1410_v50 = vmul.f32 %v1386_v36, %v1386_v36 }
 0x24b   : > { %v2730_v45 = vadd.f32 %v2664_v33, %v1247_v34  ;;  %v1239_v48 = vadd.f32 %v1960_v42, %v1238_v39  ;;  %v1384_v52 = vsel %vm1375_vm0, 0.0, %v2724_v43  ;;  %v1972_v30 = vadd.f32 %v1971_v38, %v1970_v32 }
 0x24c   : > { %v1973_v49 = vpop.f32.mrf.mxu1  ;;  %1434 = vadd.xlane.f32.xlu1 %v1405_v44  ;;  %v1408_v57 = vmul.f32 %v1384_v52, %v1384_v52 }
 0x24d   : > { %v2733_v37 = vadd.f32 %v2664_v33, %v1239_v48  ;;  %v1387_v47 = vsel %vm1375_vm0, 0.0, %v2730_v45 }
 0x24e   : > { %v1974_v53 = vpop.f32.mrf.mxu1  ;;  %1444 = vadd.xlane.f32.xlu0 %v1410_v50  ;;  %v1411_v54 = vmul.f32 %v1387_v47, %v1387_v47 }
 0x24f   : > { %v1385_v55 = vsel %vm1375_vm0, 0.0, %v2733_v37  ;;  %v1975_v16 = vadd.f32 %v1974_v53, %v1973_v49 }
 0x250   : > { %v1976_v56 = vpop.f32.mrf.mxu1  ;;  %1446 = vadd.xlane.f32.xlu1 %v1411_v54  ;;  %v1409_v60 = vmul.f32 %v1385_v55, %v1385_v55 }
 0x252   : > { %v1977_v59 = vpop.f32.mrf.mxu1  ;;  %1440 = vadd.xlane.f32.xlu0 %v1408_v57 }
 0x253   : > { %v1978_v23 = vadd.f32 %v1977_v59, %v1976_v56 }
 0x254   : > { %v1979_v61 = vpop.f32.mrf.mxu1  ;;  %1442 = vadd.xlane.f32.xlu1 %v1409_v60 }
 0x256   : > { %v1980_v62 = vpop.f32.mrf.mxu1 }
 0x257   : > { %v1981_v38 = vadd.f32 %v1980_v62, %v1979_v61 }
 0x258   : > { %v1982_v63 = vpop.f32.mrf.mxu1 }
 0x25a   : > { %v1983_v0 = vpop.f32.mrf.mxu1 }
 0x25b   : > { %v1984_v59 = vadd.f32 %v1983_v0, %v1982_v63 }
 0x25c   : > { %v1985_v2 = vpop.f32.mrf.mxu1 }
 0x25e   : > { %v1986_v3 = vpop.f32.mrf.mxu1 }
 0x25f   : > { %v1987_v17 = vadd.f32 %v1986_v3, %v1985_v2 }
 0x260   : > { %v1988_v4 = vpop.f32.mrf.mxu1 }
 0x262   : > { %v1989_v5 = vpop.f32.mrf.mxu1 }
 0x263   : > { %v1990_v53 = vadd.f32 %v1989_v5, %v1988_v4 }
 0x264   : > { %v1991_v6 = vpop.f32.mrf.mxu1 }
 0x266   : > { %v1992_v7 = vpop.f32.mrf.mxu1 }
 0x268   : > { %v2744_v9 = vpop.f32.mrf.mxu1 }
 0x26a   : > { %v2746_v10 = vpop.f32.mrf.mxu1 }
 0x26c   : > { %v1997_v11 = vpop.f32.mrf.mxu1 }
 0x26e   : > { %v1998_v12 = vpop.f32.mrf.mxu1 }
 0x26f   : > { %v1999_v5 = vadd.f32 %v1998_v12, %v1997_v11 }
 0x270   : > { %v2000_v13 = vpop.f32.mrf.mxu1 }
 0x272   : > { %v2001_v15 = vpop.f32.mrf.mxu1 }
 0x274   : > { %v2117_v18 = vpop.f32.mrf.mxu1 }
 0x275   : > { %v1260_v21 = vadd.f32 %v2117_v18, %v1975_v16 }
 0x276   : > { %v1251_v22 = vpop.f32.mrf.mxu1 }
 0x277   : > { %v2750_v25 = vadd.f32 %v2664_v33, %v1260_v21  ;;  %v1252_v26 = vadd.f32 %v1969_v19, %v1251_v22  ;;  %v1993_v19 = vadd.f32 %v1992_v7, %v1991_v6  ;;  %v1996_v6 = vadd.f32 %v2746_v10, %v2744_v9 }
 0x278   : > { %v2118_v27 = vpop.f32.mrf.mxu1 }
 0x279   : > { %v2753_v31 = vadd.f32 %v2664_v33, %v1252_v26  ;;  %v1263_v40 = vadd.f32 %v2118_v27, %v1978_v23  ;;  %v1390_v41 = vsel %vm1375_vm0, 0.0, %v2750_v25  ;;  %v2002_v27 = vadd.f32 %v2001_v15, %v2000_v13 }
 0x27a   : > { %v1254_v42 = vpop.f32.mrf.mxu1  ;;  %v1414_v34 = vmul.f32 %v1390_v41, %v1390_v41 }
 0x27b   : > { %v2759_v24 = vadd.f32 %v2664_v33, %v1263_v40  ;;  %v1255_v36 = vadd.f32 %v1972_v30, %v1254_v42  ;;  %v1388_v39 = vsel %vm1375_vm0, 0.0, %v2753_v31 }
 0x27c   : > { %v2121_v32 = vpop.f32.mrf.mxu1  ;;  %1452 = vadd.xlane.f32.xlu0 %v1414_v34  ;;  %v1412_v52 = vmul.f32 %v1388_v39, %v1388_v39 }
 0x27d   : > { %v2765_v44 = vadd.f32 %v2664_v33, %v1255_v36  ;;  %v1276_v48 = vadd.f32 %v2121_v32, %v1987_v17  ;;  %v1391_v49 = vsel %vm1375_vm0, 0.0, %v2759_v24 }
 0x27e   : > { %v1267_v50 = vpop.f32.mrf.mxu1  ;;  %v1415_v47 = vmul.f32 %v1391_v49, %v1391_v49 }
 0x27f   : > { %v2771_v54 = vadd.f32 %v2664_v33, %v1276_v48  ;;  %v1268_v55 = vadd.f32 %v1981_v38, %v1267_v50  ;;  %v1389_v56 = vsel %vm1375_vm0, 0.0, %v2765_v44 }
 0x280   : > { %v2122_v57 = vpop.f32.mrf.mxu1  ;;  %1454 = vadd.xlane.f32.xlu1 %v1415_v47  ;;  %1448 = vadd.xlane.f32.xlu0 %v1412_v52  ;;  %v1413_v3 = vmul.f32 %v1389_v56, %v1389_v56 }
 0x281   : > { %v2777_v60 = vadd.f32 %v2664_v33, %v1268_v55  ;;  %v1279_v61 = vadd.f32 %v2122_v57, %v1990_v53  ;;  %v1394_v62 = vsel %vm1375_vm0, 0.0, %v2771_v54 }
 0x282   : > { %v1270_v2 = vpop.f32.mrf.mxu1  ;;  %v1418_v4 = vmul.f32 %v1394_v62, %v1394_v62 }
 0x283   : > { %v2783_v16 = vadd.f32 %v2664_v33, %v1279_v61  ;;  %v1271_v18 = vadd.f32 %v1984_v59, %v1270_v2  ;;  %v1392_v63 = vsel %vm1375_vm0, 0.0, %v2777_v60 }
 0x284   : > { %v2125_v0 = vpop.f32.mrf.mxu1  ;;  %1450 = vadd.xlane.f32.xlu1 %v1413_v3  ;;  %1460 = vadd.xlane.f32.xlu0 %v1418_v4  ;;  %v1416_v26 = vmul.f32 %v1392_v63, %v1392_v63 }
 0x285   : > { %v2789_v21 = vadd.f32 %v2664_v33, %v1271_v18  ;;  %v1292_v22 = vadd.f32 %v2125_v0, %v1999_v5  ;;  %v1395_v11 = vsel %vm1375_vm0, 0.0, %v2783_v16 }
 0x286   : > { %v1283_v12 = vpop.f32.mrf.mxu1  ;;  %v1419_v23 = vmul.f32 %v1395_v11, %v1395_v11 }
 0x287   : > { %v1284_v30 = vadd.f32 %v1993_v19, %v1283_v12  ;;  %v1393_v40 = vsel %vm1375_vm0, 0.0, %v2789_v21  ;;  %v2800_v7 = vadd.f32 %v2664_v33, %v1292_v22 }
 0x288   : > { %v2126_v41 = vpop.f32.mrf.mxu1  ;;  %1462 = vadd.xlane.f32.xlu1 %v1419_v23  ;;  %1456 = vadd.xlane.f32.xlu0 %v1416_v26  ;;  %v1417_v13 = vmul.f32 %v1393_v40, %v1393_v40 }
 0x289   : > { %v2803_v42 = vadd.f32 %v2664_v33, %v1284_v30  ;;  %v1295_v34 = vadd.f32 %v2126_v41, %v2002_v27  ;;  %v1398_v10 = vsel %vm1375_vm0, 0.0, %v2800_v7 }
 0x28a   : > { %v1286_v17 = vpop.f32.mrf.mxu1  ;;  %v1422_v49 = vmul.f32 %v1398_v10, %v1398_v10 }
 0x28b   : > { %v1287_v15 = vadd.f32 %v1996_v6, %v1286_v17  ;;  %v1396_v36 = vsel %vm1375_vm0, 0.0, %v2803_v42  ;;  %v2809_v32 = vadd.f32 %v2664_v33, %v1295_v34 }
 0x28c   : > { %1458 = vadd.xlane.f32.xlu1 %v1417_v13  ;;  %v1420_v39 = vmul.f32 %v1396_v36, %v1396_v36 }
 0x28d   : > { %v2812_v9 = vadd.f32 %v2664_v33, %v1287_v15  ;;  %v1399_v50 = vsel %vm1375_vm0, 0.0, %v2809_v32 }
 0x28e   : > { %1464 = vadd.xlane.f32.xlu0 %v1420_v39  ;;  %v1423_v47 = vmul.f32 %v1399_v50, %v1399_v50 }
 0x28f   : > { %v1397_v38 = vsel %vm1375_vm0, 0.0, %v2812_v9 }
 0x290   : > { %v1421_v48 = vmul.f32 %v1397_v38, %v1397_v38 }
 0x292   : > { %1466 = vadd.xlane.f32.xlu1 %v1421_v48  ;;  %1468 = vadd.xlane.f32.xlu0 %v1422_v49 }
 0x296   : > { %1470 = vadd.xlane.f32.xlu1 %v1423_v47 }
 0x2c5   : > { %v1429_v33 = vpop.xlane.xlu1 %1428 }
 0x2c6   : > { %v1474_v52 = vadd.f32 1.0, %v1429_v33 }
 0x2c7   : > { %v1425_v53 = vpop.xlane.xlu0 %1424 }
 0x2c8   : > { %2282 = vrsqrt.f32 %v1474_v52  ;;  %v1472_v55 = vadd.f32 1.0, %v1425_v53  ;;  %vm1512_vm1 = vcmp.eq.f32.partialorder %v1474_v52, inf  ;;  %v1515_v22 = vand.u32 2147483648, %v1474_v52 }
 0x2c9   : > { %v1431_v56 = vpop.xlane.xlu1 %1430  ;;  %vm1514_vm2 = vcmp.eq.f32.partialorder %v1474_v52, 0.0 }
 0x2ca   : > { %v1475_v57 = vadd.f32 1.0, %v1431_v56  ;;  %2284 = vrsqrt.f32 %v1472_v55  ;;  %vm1498_vm3 = vcmp.eq.f32.partialorder %v1472_v55, inf  ;;  %vm1500_vm4 = vcmp.eq.f32.partialorder %v1472_v55, 0.0 }
 0x2cb   : > { %v1427_v59 = vpop.xlane.xlu0 %1426  ;;  %v1501_v17 = vand.u32 2147483648, %v1472_v55 }
 0x2cc   : > { %2286 = vrsqrt.f32 %v1475_v57  ;;  %v2823_v61 = vadd.f32 1.0, %v1427_v59  ;;  %vm1519_vm5 = vcmp.eq.f32.partialorder %v1475_v57, inf  ;;  %v1522_v36 = vand.u32 2147483648, %v1475_v57 }
 0x2cd   : > { %vm1521_vm6 = vcmp.eq.f32.partialorder %v1475_v57, 0.0 }
 0x2ce   : > { %2288 = vrsqrt.f32 %v2823_v61  ;;  %vm1505_vm7 = vcmp.eq.f32.partialorder %v2823_v61, inf  ;;  %v1508_v53 = vand.u32 2147483648, %v2823_v61  ;;  %vm1507_vm8 = vcmp.eq.f32.partialorder %v2823_v61, 0.0 }
 0x2cf   : > { %v1437_v62 = vpop.xlane.xlu0 %1436 }
 0x2d0   : > { %v2826_v2 = vadd.f32 1.0, %v1437_v62 }
 0x2d1   : > { %v1439_v3 = vpop.xlane.xlu1 %1438 }
 0x2d2   : > { %2290 = vrsqrt.f32 %v2826_v2  ;;  %v2830_v4 = vadd.f32 1.0, %v1439_v3  ;;  %vm1540_vm9 = vcmp.eq.f32.partialorder %v2826_v2, inf  ;;  %v1543_v62 = vand.u32 2147483648, %v2826_v2 }
 0x2d3   : > { %v1433_v5 = vpop.xlane.xlu0 %1432  ;;  %vm1542_vm10 = vcmp.eq.f32.partialorder %v2826_v2, 0.0 }
 0x2d4   : > { %v2834_v18 = vadd.f32 1.0, %v1433_v5  ;;  %2292 = vrsqrt.f32 %v2830_v4  ;;  %vm1547_vm11 = vcmp.eq.f32.partialorder %v2830_v4, inf  ;;  %vm1549_vm12 = vcmp.eq.f32.partialorder %v2830_v4, 0.0 }
 0x2d5   : > { %v2283_v63 = vpop.eup %2282  ;;  %v1435_v0 = vpop.xlane.xlu1 %1434 }
 0x2d6   : > { %v1511_v19 = vmul.f32 %v2283_v63, %v1474_v52  ;;  %2294 = vrsqrt.f32 %v2834_v18  ;;  %v2838_v11 = vadd.f32 1.0, %v1435_v0  ;;  %vm1526_vm13 = vcmp.eq.f32.partialorder %v2834_v18, inf }
 0x2d7   : > { %v1445_v12 = vpop.xlane.xlu0 %1444  ;;  %v2285_v23 = vpop.eup %2284  ;;  %vm1528_vm14 = vcmp.eq.f32.partialorder %v2834_v18, 0.0 }
 0x2d8   : > { %v1513_v26 = vsel %vm1512_vm1, %v1474_v52, %v1511_v19  ;;  %v2840_v27 = vadd.f32 1.0, %v1445_v12  ;;  %v1497_v41 = vmul.f32 %v2285_v23, %v1472_v55  ;;  %2296 = vrsqrt.f32 %v2838_v11 }
 0x2d9   : > { %v2287_v30 = vpop.eup %2286  ;;  %v1516_v40 = vsel %vm1514_vm2, %v1515_v22, %v1513_v26  ;;  %v1447_v6 = vpop.xlane.xlu1 %1446  ;;  %v1550_v22 = vand.u32 2147483648, %v2830_v4  ;;  %v1529_v23 = vand.u32 2147483648, %v2834_v18  ;;  %vm1533_vm15 = vcmp.eq.f32.partialorder %v2838_v11, inf }
 0x2da   : > { %v1666_v34 = vsel %vm1375_vm0, %v1516_v40, %v2668_v35  ;;  %v1518_v13 = vmul.f32 %v2287_v30, %v1475_v57  ;;  %v1499_v15 = vsel %vm1498_vm3, %v1472_v55, %v1497_v41  ;;  %2298 = vrsqrt.f32 %v2840_v27 }
 0x2db   : > { %1690 = vst [vmem:[%s2846_s12 + $0x10] sm:$0xff] %v1666_v34  ;;  %v1441_v39 = vpop.xlane.xlu0 %1440  ;;  %v2289_v10 = vpop.eup %2288  ;;  %v1502_v38 = vsel %vm1500_vm4, %v1501_v17, %v1499_v15  ;;  %v2850_v35 = vadd.f32 1.0, %v1447_v6  ;;  %v1536_v17 = vand.u32 2147483648, %v2838_v11  ;;  %vm1535_vm1 = vcmp.eq.f32.partialorder %v2838_v11, 0.0 }
 0x2dc   : > { %v1520_v48 = vsel %vm1519_vm5, %v1475_v57, %v1518_v13  ;;  %v1664_v49 = vsel %vm1375_vm0, %v1502_v38, %v2676_v46  ;;  %v1504_v47 = vmul.f32 %v2289_v10, %v2823_v61  ;;  %v2856_v33 = vadd.f32 1.0, %v1441_v39 }
 0x2dd   : > { %v1523_v50 = vsel %vm1521_vm6, %v1522_v36, %v1520_v48  ;;  %1688 = vst [vmem:[%s2846_s12] sm:$0xff] %v1664_v49  ;;  %2300 = vrsqrt.f32 %v2850_v35  ;;  %v1443_v55 = vpop.xlane.xlu1 %1442  ;;  %vm1568_vm2 = vcmp.eq.f32.partialorder %v2840_v27, inf  ;;  %v1571_v15 = vand.u32 2147483648, %v2840_v27 }
 0x2de   : > { %v1667_v52 = vsel %vm1375_vm0, %v1523_v50, %v2679_v51  ;;  %v1506_v46 = vsel %vm1505_vm7, %v2823_v61, %v1504_v47  ;;  %2302 = vrsqrt.f32 %v2856_v33  ;;  %v2875_v3 = vadd.f32 1.0, %v1443_v55 }
 0x2df   : > { %v2291_v56 = vpop.eup %2290  ;;  %1691 = vst [vmem:[%s2846_s12 + $0x18] sm:$0xff] %v1667_v52  ;;  %v1509_v57 = vsel %vm1507_vm8, %v1508_v53, %v1506_v46  ;;  %vm1570_vm3 = vcmp.eq.f32.partialorder %v2840_v27, 0.0  ;;  %vm1575_vm4 = vcmp.eq.f32.partialorder %v2850_v35, inf  ;;  %v1578_v49 = vand.u32 2147483648, %v2850_v35 }
 0x2e0   : > { %v1539_v59 = vmul.f32 %v2291_v56, %v2826_v2  ;;  %v1665_v51 = vsel %vm1375_vm0, %v1509_v57, %v2685_v58  ;;  %2304 = vrsqrt.f32 %v2875_v3  ;;  %vm1577_vm5 = vcmp.eq.f32.partialorder %v2850_v35, 0.0 }
 0x2e1   : > { %v2293_v5 = vpop.eup %2292  ;;  %1689 = vst [vmem:[%s2846_s12 + $0x8] sm:$0xff] %v1665_v51  ;;  %vm1554_vm6 = vcmp.eq.f32.partialorder %v2856_v33, inf  ;;  %v1557_v50 = vand.u32 2147483648, %v2856_v33  ;;  %vm1556_vm7 = vcmp.eq.f32.partialorder %v2856_v33, 0.0  ;;  %vm1561_vm8 = vcmp.eq.f32.partialorder %v2875_v3, inf }
 0x2e2   : > { %v1541_v61 = vsel %vm1540_vm9, %v2826_v2, %v1539_v59  ;;  %v1546_v19 = vmul.f32 %v2293_v5, %v2830_v4  ;;  %v1564_v46 = vand.u32 2147483648, %v2875_v3  ;;  %vm1563_vm9 = vcmp.eq.f32.partialorder %v2875_v3, 0.0 }
 0x2e3   : > { %v2295_v63 = vpop.eup %2294  ;;  %v1544_v0 = vsel %vm1542_vm10, %v1543_v62, %v1541_v61 }
 0x2e4   : > { %v1670_v58 = vsel %vm1375_vm0, %v1544_v0, %v2691_v1  ;;  %v1525_v12 = vmul.f32 %v2295_v63, %v2834_v18  ;;  %v1548_v2 = vsel %vm1547_vm11, %v2830_v4, %v1546_v19 }
 0x2e5   : > { %1694 = vst [vmem:[%s2846_s12 + $0x30] sm:$0xff] %v1670_v58  ;;  %v2297_v26 = vpop.eup %2296  ;;  %v1551_v30 = vsel %vm1549_vm12, %v1550_v22, %v1548_v2 }
 0x2e6   : > { %v1527_v1 = vsel %vm1526_vm13, %v2834_v18, %v1525_v12  ;;  %v1671_v40 = vsel %vm1375_vm0, %v1551_v30, %v2703_v14  ;;  %v1532_v6 = vmul.f32 %v2297_v26, %v2838_v11 }
 0x2e7   : > { %v1530_v41 = vsel %vm1528_vm14, %v1529_v23, %v1527_v1  ;;  %v2299_v34 = vpop.eup %2298  ;;  %1695 = vst [vmem:[%s2846_s12 + $0x38] sm:$0xff] %v1671_v40 }
 0x2e8   : > { %v1668_v4 = vsel %vm1375_vm0, %v1530_v41, %v2697_v8  ;;  %v1534_v18 = vsel %vm1533_vm15, %v2838_v11, %v1532_v6  ;;  %v1567_v14 = vmul.f32 %v2299_v34, %v2840_v27 }
 0x2e9   : > { %1692 = vst [vmem:[%s2846_s12 + $0x20] sm:$0xff] %v1668_v4  ;;  %v1537_v13 = vsel %vm1535_vm1, %v1536_v17, %v1534_v18 }
 0x2ea   : > { %v2301_v36 = vpop.eup %2300  ;;  %v1669_v8 = vsel %vm1375_vm0, %v1537_v13, %v2708_v20  ;;  %v1569_v39 = vsel %vm1568_vm2, %v2840_v27, %v1567_v14 }
 0x2eb   : > { %v2303_v10 = vpop.eup %2302  ;;  %1693 = vst [vmem:[%s2846_s12 + $0x28] sm:$0xff] %v1669_v8  ;;  %v1572_v11 = vsel %vm1570_vm3, %v1571_v15, %v1569_v39  ;;  %v1574_v38 = vmul.f32 %v2301_v36, %v2850_v35 }
 0x2ec   : > { %v1674_v48 = vsel %vm1375_vm0, %v1572_v11, %v2717_v28  ;;  %v1553_v20 = vmul.f32 %v2303_v10, %v2856_v33 }
 0x2ed   : > { %1698 = vst [vmem:[%s2846_s12 + $0x50] sm:$0xff] %v1674_v48  ;;  %v1576_v27 = vsel %vm1575_vm4, %v2850_v35, %v1574_v38  ;;  %v2305_v52 = vpop.eup %2304 }
 0x2ee   : > { %v1579_v47 = vsel %vm1577_vm5, %v1578_v49, %v1576_v27  ;;  %v1555_v28 = vsel %vm1554_vm6, %v2856_v33, %v1553_v20  ;;  %v1560_v56 = vmul.f32 %v2305_v52, %v2875_v3 }
 0x2ef   : > { %v1675_v53 = vsel %vm1375_vm0, %v1579_v47, %v2730_v45  ;;  %v1558_v55 = vsel %vm1556_vm7, %v1557_v50, %v1555_v28 }
 0x2f0   : > { %1699 = vst [vmem:[%s2846_s12 + $0x58] sm:$0xff] %v1675_v53  ;;  %v1672_v35 = vsel %vm1375_vm0, %v1558_v55, %v2724_v43  ;;  %v1562_v33 = vsel %vm1561_vm8, %v2875_v3, %v1560_v56 }
 0x2f1   : > { %1696 = vst [vmem:[%s2846_s12 + $0x40] sm:$0xff] %v1672_v35  ;;  %v1565_v57 = vsel %vm1563_vm9, %v1564_v46, %v1562_v33 }
 0x2f2   : > { %v1673_v45 = vsel %vm1375_vm0, %v1565_v57, %v2733_v37 }
 0x2f3   : > { %1697 = vst [vmem:[%s2846_s12 + $0x48] sm:$0xff] %v1673_v45 }
 0x305   : > { %v1453_v59 = vpop.xlane.xlu0 %1452 }
 0x306   : > { %v1486_v51 = vadd.f32 1.0, %v1453_v59 }
 0x308   : > { %2306 = vrsqrt.f32 %v1486_v51  ;;  %vm1596_vm10 = vcmp.eq.f32.partialorder %v1486_v51, inf  ;;  %v1599_v1 = vand.u32 2147483648, %v1486_v51  ;;  %vm1598_vm11 = vcmp.eq.f32.partialorder %v1486_v51, 0.0 }
 0x309   : > { %v1455_v43 = vpop.xlane.xlu1 %1454  ;;  %v1449_v62 = vpop.xlane.xlu0 %1448 }
 0x30a   : > { %v1487_v5 = vadd.f32 1.0, %v1455_v43  ;;  %v1484_v61 = vadd.f32 1.0, %v1449_v62 }
 0x30c   : > { %2308 = vrsqrt.f32 %v1487_v5  ;;  %vm1603_vm12 = vcmp.eq.f32.partialorder %v1487_v5, inf  ;;  %vm1605_vm13 = vcmp.eq.f32.partialorder %v1487_v5, 0.0  ;;  %v1606_v13 = vand.u32 2147483648, %v1487_v5 }
 0x30d   : > { %2310 = vrsqrt.f32 %v1484_v61  ;;  %v1451_v63 = vpop.xlane.xlu1 %1450  ;;  %v1461_v0 = vpop.xlane.xlu0 %1460  ;;  %vm1582_vm14 = vcmp.eq.f32.partialorder %v1484_v61, inf  ;;  %v1585_v10 = vand.u32 2147483648, %v1484_v61  ;;  %vm1584_vm15 = vcmp.eq.f32.partialorder %v1484_v61, 0.0 }
 0x30e   : > { %v2948_v19 = vadd.f32 1.0, %v1451_v63  ;;  %v2950_v3 = vadd.f32 1.0, %v1461_v0 }
 0x310   : > { %2312 = vrsqrt.f32 %v2948_v19  ;;  %vm1589_vm1 = vcmp.eq.f32.partialorder %v2948_v19, inf  ;;  %vm1591_vm2 = vcmp.eq.f32.partialorder %v2948_v19, 0.0  ;;  %v1592_v52 = vand.u32 2147483648, %v2948_v19 }
 0x311   : > { %2314 = vrsqrt.f32 %v2950_v3  ;;  %v1463_v37 = vpop.xlane.xlu1 %1462  ;;  %v1457_v58 = vpop.xlane.xlu0 %1456  ;;  %vm1624_vm3 = vcmp.eq.f32.partialorder %v2950_v3, inf  ;;  %v1627_v35 = vand.u32 2147483648, %v2950_v3  ;;  %vm1626_vm4 = vcmp.eq.f32.partialorder %v2950_v3, 0.0 }
 0x312   : > { %v2954_v22 = vadd.f32 1.0, %v1463_v37  ;;  %v2956_v12 = vadd.f32 1.0, %v1457_v58 }
 0x314   : > { %2316 = vrsqrt.f32 %v2954_v22  ;;  %vm1631_vm5 = vcmp.eq.f32.partialorder %v2954_v22, inf  ;;  %vm1633_vm6 = vcmp.eq.f32.partialorder %v2954_v22, 0.0  ;;  %v1634_v62 = vand.u32 2147483648, %v2954_v22 }
 0x315   : > { %v2307_v2 = vpop.eup %2306  ;;  %2318 = vrsqrt.f32 %v2956_v12  ;;  %v1459_v23 = vpop.xlane.xlu1 %1458  ;;  %vm1610_vm7 = vcmp.eq.f32.partialorder %v2956_v12, inf  ;;  %vm1612_vm8 = vcmp.eq.f32.partialorder %v2956_v12, 0.0 }
 0x316   : > { %v1595_v26 = vmul.f32 %v2307_v2, %v1486_v51  ;;  %v2960_v30 = vadd.f32 1.0, %v1459_v23 }
 0x317   : > { %v1465_v40 = vpop.xlane.xlu0 %1464 }
 0x318   : > { %v1597_v41 = vsel %vm1596_vm10, %v1486_v51, %v1595_v26  ;;  %2320 = vrsqrt.f32 %v2960_v30  ;;  %v2963_v4 = vadd.f32 1.0, %v1465_v40  ;;  %vm1617_vm9 = vcmp.eq.f32.partialorder %v2960_v30, inf }
 0x319   : > { %v2309_v6 = vpop.eup %2308  ;;  %v1600_v34 = vsel %vm1598_vm11, %v1599_v1, %v1597_v41  ;;  %vm1619_vm10 = vcmp.eq.f32.partialorder %v2960_v30, 0.0 }
 0x31a   : > { %v2311_v17 = vpop.eup %2310  ;;  %v1678_v18 = vsel %vm1375_vm0, %v1600_v34, %v2750_v25  ;;  %v1602_v14 = vmul.f32 %v2309_v6, %v1487_v5  ;;  %2322 = vrsqrt.f32 %v2963_v4  ;;  %vm1638_vm11 = vcmp.eq.f32.partialorder %v2963_v4, inf }
 0x31b   : > { %1702 = vst [vmem:[%s2846_s12 + $0x70] sm:$0xff] %v1678_v18  ;;  %v1581_v15 = vmul.f32 %v2311_v17, %v1484_v61  ;;  %v1467_v36 = vpop.xlane.xlu1 %1466  ;;  %v1469_v8 = vpop.xlane.xlu0 %1468 }
 0x31c   : > { %v1604_v39 = vsel %vm1603_vm12, %v1487_v5, %v1602_v14  ;;  %v2970_v11 = vadd.f32 1.0, %v1467_v36  ;;  %v2972_v38 = vadd.f32 1.0, %v1469_v8  ;;  %vm1640_vm12 = vcmp.eq.f32.partialorder %v2963_v4, 0.0 }
 0x31d   : > { %v2313_v48 = vpop.eup %2312  ;;  %v1607_v25 = vsel %vm1605_vm13, %v1606_v13, %v1604_v39  ;;  %v1583_v49 = vsel %vm1582_vm14, %v1484_v61, %v1581_v15  ;;  %v1613_v61 = vand.u32 2147483648, %v2956_v12 }
 0x31e   : > { %v2315_v20 = vpop.eup %2314  ;;  %v1679_v27 = vsel %vm1375_vm0, %v1607_v25, %v2759_v24  ;;  %v1586_v50 = vsel %vm1584_vm15, %v1585_v10, %v1583_v49  ;;  %v1588_v47 = vmul.f32 %v2313_v48, %v2948_v19  ;;  %2324 = vrsqrt.f32 %v2970_v11 }
 0x31f   : > { %1703 = vst [vmem:[%s2846_s12 + $0x78] sm:$0xff] %v1679_v27  ;;  %v1676_v28 = vsel %vm1375_vm0, %v1586_v50, %v2753_v31  ;;  %v1623_v53 = vmul.f32 %v2315_v20, %v2950_v3  ;;  %v1471_v55 = vpop.xlane.xlu1 %1470  ;;  %2326 = vrsqrt.f32 %v2972_v38  ;;  %vm1645_vm13 = vcmp.eq.f32.partialorder %v2970_v11, inf }
 0x320   : > { %1700 = vst [vmem:[%s2846_s12 + $0x60] sm:$0xff] %v1676_v28  ;;  %v1590_v24 = vsel %vm1589_vm1, %v2948_v19, %v1588_v47  ;;  %v2999_v51 = vadd.f32 1.0, %v1471_v55  ;;  %vm1647_vm14 = vcmp.eq.f32.partialorder %v2970_v11, 0.0  ;;  %vm1652_vm15 = vcmp.eq.f32.partialorder %v2972_v38, inf }
 0x321   : > { %v2317_v56 = vpop.eup %2316  ;;  %v1593_v31 = vsel %vm1591_vm2, %v1592_v52, %v1590_v24  ;;  %v1625_v46 = vsel %vm1624_vm3, %v2950_v3, %v1623_v53  ;;  %v1655_v14 = vand.u32 2147483648, %v2972_v38  ;;  %vm1654_vm1 = vcmp.eq.f32.partialorder %v2972_v38, 0.0 }
 0x322   : > { %v2319_v33 = vpop.eup %2318  ;;  %v1677_v57 = vsel %vm1375_vm0, %v1593_v31, %v2765_v44  ;;  %v1628_v45 = vsel %vm1626_vm4, %v1627_v35, %v1625_v46  ;;  %v1630_v59 = vmul.f32 %v2317_v56, %v2954_v22  ;;  %2328 = vrsqrt.f32 %v2999_v51 }
 0x323   : > { %1701 = vst [vmem:[%s2846_s12 + $0x68] sm:$0xff] %v1677_v57  ;;  %v1682_v43 = vsel %vm1375_vm0, %v1628_v45, %v2771_v54  ;;  %v1609_v5 = vmul.f32 %v2319_v33, %v2956_v12  ;;  %vm1659_vm2 = vcmp.eq.f32.partialorder %v2999_v51, inf  ;;  %vm1661_vm3 = vcmp.eq.f32.partialorder %v2999_v51, 0.0 }
 0x324   : > { %1706 = vst [vmem:[%s2846_s12 + $0x90] sm:$0xff] %v1682_v43  ;;  %v1632_v44 = vsel %vm1631_vm5, %v2954_v22, %v1630_v59  ;;  %v1620_v22 = vand.u32 2147483648, %v2960_v30 }
 0x325   : > { %v2321_v63 = vpop.eup %2320  ;;  %v1635_v0 = vsel %vm1633_vm6, %v1634_v62, %v1632_v44  ;;  %v1611_v54 = vsel %vm1610_vm7, %v2956_v12, %v1609_v5 }
 0x326   : > { %v1683_v19 = vsel %vm1375_vm0, %v1635_v0, %v2783_v16  ;;  %v1614_v3 = vsel %vm1612_vm8, %v1613_v61, %v1611_v54  ;;  %v1616_v37 = vmul.f32 %v2321_v63, %v2960_v30 }
 0x327   : > { %1707 = vst [vmem:[%s2846_s12 + $0x98] sm:$0xff] %v1683_v19  ;;  %v1680_v58 = vsel %vm1375_vm0, %v1614_v3, %v2777_v60  ;;  %v2323_v2 = vpop.eup %2322  ;;  %v1641_v60 = vand.u32 2147483648, %v2963_v4 }
 0x328   : > { %1704 = vst [vmem:[%s2846_s12 + $0x80] sm:$0xff] %v1680_v58  ;;  %v1618_v12 = vsel %vm1617_vm9, %v2960_v30, %v1616_v37  ;;  %v1637_v23 = vmul.f32 %v2323_v2, %v2963_v4 }
 0x329   : > { %v1621_v16 = vsel %vm1619_vm10, %v1620_v22, %v1618_v12 }
 0x32a   : > { %v1681_v26 = vsel %vm1375_vm0, %v1621_v16, %v2789_v21  ;;  %v1639_v40 = vsel %vm1638_vm11, %v2963_v4, %v1637_v23  ;;  %v1648_v21 = vand.u32 2147483648, %v2970_v11 }
 0x32b   : > { %v2325_v1 = vpop.eup %2324  ;;  %1705 = vst [vmem:[%s2846_s12 + $0x88] sm:$0xff] %v1681_v26  ;;  %v1642_v41 = vsel %vm1640_vm12, %v1641_v60, %v1639_v40 }
 0x32c   : > { %v1644_v30 = vmul.f32 %v2325_v1, %v2970_v11  ;;  %v2327_v6 = vpop.eup %2326  ;;  %v1684_v34 = vsel %vm1375_vm0, %v1642_v41, %v2803_v42 }
 0x32d   : > { %1708 = vst [vmem:[%s2846_s12 + $0xa0] sm:$0xff] %v1684_v34  ;;  %v1651_v4 = vmul.f32 %v2327_v6, %v2972_v38 }
 0x32e   : > { %v1646_v17 = vsel %vm1645_vm13, %v2970_v11, %v1644_v30 }
 0x32f   : > { %v1649_v18 = vsel %vm1647_vm14, %v1648_v21, %v1646_v17  ;;  %v1653_v13 = vsel %vm1652_vm15, %v2972_v38, %v1651_v4  ;;  %v2329_v15 = vpop.eup %2328 }
 0x330   : > { %v1685_v42 = vsel %vm1375_vm0, %v1649_v18, %v2812_v9  ;;  %v1656_v36 = vsel %vm1654_vm1, %v1655_v14, %v1653_v13  ;;  %v1658_v39 = vmul.f32 %v2329_v15, %v2999_v51  ;;  %v1662_v9 = vand.u32 2147483648, %v2999_v51 }
 0x331   : > { %1709 = vst [vmem:[%s2846_s12 + $0xa8] sm:$0xff] %v1685_v42  ;;  %v1686_v8 = vsel %vm1375_vm0, %v1656_v36, %v2800_v7 }
 0x332   : > { %1710 = vst [vmem:[%s2846_s12 + $0xb0] sm:$0xff] %v1686_v8  ;;  %v1660_v10 = vsel %vm1659_vm2, %v2999_v51, %v1658_v39 }
 0x333   : > { %v1663_v11 = vsel %vm1661_vm3, %v1662_v9, %v1660_v10 }
 0x334   : > { %v1687_v7 = vsel %vm1375_vm0, %v1663_v11, %v2809_v32 }
 0x335   : > { %1711 = vst [vmem:[%s2846_s12 + $0xb8] sm:$0xff] %v1687_v7 }
 0x336   : > { %2343 = shalt.err (!%p2340_p5)
}
 0x337   : > { %s2344_s6 = scalar_lea.hbm %s3071_s22, 3072  ;;  %s2348_s9 = scalar_lea.hbm %s3128_s4, 6144 }
 0x338   : > { %p2345_p6 = scmp.ne.s32.totalorder %s3071_s22, %s2344_s6  ;;  %p2349_p10 = scmp.lt.s32.totalorder %s3071_s22, %s3128_s4 }
 0x339   : > { %p2350_p11 = scmp.lt.s32.totalorder %s2348_s9, %s2344_s6 }
 0x33a   : > { %p2346_p7 = pnand %p2345_p6, %p2476_p4 }
 0x33b   : > { %p2351_p12 = por %p2350_p11, %p2349_p10 }
 0x33c   : > { %p2347_p9 = pneg %p2346_p7 }
 0x33e   : > { %p2352_p13 = pnand %p2351_p12, %p2347_p9 }
 0x340   : > { %2355 = shalt.err (!%p2352_p13)
}
 0x341   : > { %s2409_s12 = smov 128   ;;  %s2410_s13 = smov 8  }
 0x342   : > { %2145 = dma.vmem_to_hbm [thread:$0]  (%p2476_p4), %s3066_s14, 3072, %s3071_s22, %s3079_s24, %s2409_s12, %s2409_s12, %s2410_s13  }
 0x343 PF: > { %p2151_p0 = scmp.ge.s32.totalorder %s2406_s20, 2  ;;  %s1741_s18 = sand.u32 1, %s2386_s15  }
 0x344   : > { %s1742_s21 = scalar_lea.sflag [#allocation4], %s1741_s18 }
 0x345   : > { %p2148_p1 = pnand %p2151_p0, %p2483_p8 }
 0x347   : > { %p2149_p2 = pneg %p2148_p1 }
 0x349   : > { %2381 = dma.done.wait (%p2149_p2), %s1742_s21, 3072  }
 0x34a   : > { %2383 = vsyncadd (%p2149_p2), %s1742_s21, 4294964224  ;;  %s17_s20 = sadd.s32 1, %s2406_s20   ;;  %s3131_s15 = smov %s2390_s16 }
 0x34b   : > { %p14_p3 = scmp.ge.s32.totalorder %s17_s20, 4   ;;  %s3132_s16 = smov %s2394_s17 }
 0x34c   : > { %s3133_s17 = smov %s2489_s28  ;;  %s3134_s18 = smov %s2402_s19 }
 0x34d   : > { %s3135_s19 = smov %s3137_s23  ;;  %16 = sbr.rel (!%p14_p3) target bundleno = 4 (0x4), region = 80 }
 0x352   :  { %1747 = vsyncpa [#allocation4], 1 }
 0x353   :  { %1749 = vsyncpa [#allocation4 + $0x1], 1 }

// kernel: hyperse_forward_padded.2
= control target key start
LH: loop header
LB: loop body
LE: loop exit
PB: predicated region body
PF: predicated region fallthrough
CT: control target
= control target key end

     0   :  { %9 = vsyncpa [#allocation4], 0  ;;  %s3546_s0 = inlined_call_operand.hbm [shape: bf16[384,128], index: 0, kind: input, shape index: {}]   ;;  %s3547_s1 = inlined_call_operand.hbm [shape: bf16[128,128], index: 1, kind: input, shape index: {}]   ;;  %s3548_s2 = inlined_call_operand.hbm [shape: bf16[384,384], index: 2, kind: input, shape index: {}]   ;;  %s3549_s3 = inlined_call_operand.hbm [shape: f32[1,128], index: 3, kind: input, shape index: {}]   ;;  %s3550_s4 = inlined_call_operand.vmem [shape: bf16[384,128], index: 4, kind: output, shape index: {}]  }
   0x1   :  { %10 = vsyncpa [#allocation6], 0  ;;  %s2876_s15 = smov 0   ;;  %s2878_s16 = smov 0  }
   0x2   :  { %s2880_s17 = smov 0   ;;  %s2882_s18 = smov 0  }
   0x3   :  { %s2884_s19 = smov 0   ;;  %s2886_s20 = smov 0  }
   0x4 LB: > { %s1988_s21 = sadd.s32 4294967295, %s2841_s20   ;;  %s79_s22 = sadd.s32 1, %s2829_s17  ;;  %s2841_s20 = sphi %s2886_s20, %s16_s20   ;;  %s2837_s19 = sphi %s2884_s19, %s3586_s19   ;;  %s2833_s18 = sphi %s2882_s18, %s3585_s18   ;;  %s2829_s17 = sphi %s2880_s17, %s3584_s17   ;;  %s2825_s16 = sphi %s2878_s16, %s3583_s16   ;;  %s2821_s15 = sphi %s2876_s15, %s3582_s15  }
   0x5   : > { %p86_p0 = scmp.ne.s32.totalorder %s2829_s17, %s2825_s16  ;;  %p87_p1 = scmp.eq.s32.totalorder %s2841_s20, 0 }
   0x6   : > { %p92_p2 = scmp.ne.s32.totalorder %s2825_s16, %s2821_s15  ;;  %p2912_p3 = scmp.eq.s32.totalorder %s1988_s21, 0 }
   0x7   : > { %p88_p4 = por %p87_p1, %p86_p0  ;;  %p1990_p5 = scmp.ge.s32.totalorder %s2841_s20, 1 }
   0x8   : > { %s3564_s23 = scalar_select %p2912_p3, 1, 0 }
   0x9   : > { %p2919_p6 = por %p2912_p3, %p92_p2  ;;  %p150_p7 = scmp.lt.s32.totalorder %s2841_s20, 3 }
   0xa   : > { %s2843_s26 = smov [#allocation3]   ;;  %p2485_p10 = scmp.lt.s32.totalorder %s2841_s20, 2 }
   0xb   : > { %s3565_s24 = scalar_select %p2919_p6, 1, 0 }
   0xc   : > { %p2924_p8 = pnand %p1990_p5, %p150_p7  ;;  %s162_s27 = sshll.u32 %s2843_s26, 4  ;;  %s163_s27 = int_to_ptr.vmem [resolvable:$true] %s162_s27 }
   0xd   : > { %p2937_p12 = pnand %p2485_p10, %p88_p4  ;;  %s2844_s30 = smov [#allocation5]  }
   0xe   : > { %p2468_p9 = pneg %p2924_p8  ;;  %s175_s5 = sshll.u32 %s2844_s30, 4  ;;  %s176_s5 = int_to_ptr.vmem [resolvable:$true] %s175_s5 }
   0xf   : > { %s2684_s6 = scalar_lea.vmem %s163_s27, 3072  ;;  %p2692_p5 = scmp.lt.s32.totalorder %s163_s27, %s163_s27 }
  0x10   : > { %p2933_p11 = pnand %p2468_p9, %p2912_p3  ;;  %p2685_p0 = scmp.ne.s32.totalorder %s163_s27, %s2684_s6 }
  0x11   : > { %p2693_p7 = scmp.lt.s32.totalorder %s2684_s6, %s2684_s6 }
  0x12   : > { %p2675_p13 = pneg %p2933_p11 }
  0x13   : > { %p2694_p9 = por %p2693_p7, %p2692_p5 }
  0x14   : > { %p2687_p1 = pnand %p2685_p0, %p2675_p13 }
  0x16   : > { %p2688_p2 = pneg %p2687_p1 }
  0x18   : > { %p2695_p6 = pnand %p2694_p9, %p2688_p2 }
  0x1a   : > { %2698 = shalt.err (!%p2695_p6)
}
  0x1b   : > { %s2845_s7 = smov 64   ;;  %s2846_s8 = smov 4  }
  0x1c   : > { %2471 = dma.hbm_to_vmem [thread:$0]  (!%p2933_p11), %s3546_s0, 3072, %s163_s27, [#allocation4], %s2845_s7, %s2845_s7, %s2846_s8  }
  0x1d   : > { %s2710_s11 = scalar_lea.vmem %s176_s5, 1024  ;;  %p2718_p1 = scmp.lt.s32.totalorder %s176_s5, %s176_s5 }
  0x1e   : > { %p2711_p4 = scmp.ne.s32.totalorder %s176_s5, %s2710_s11  ;;  %p2719_p3 = scmp.lt.s32.totalorder %s2710_s11, %s2710_s11 }
  0x20   : > { %p2713_p10 = pnand %p2711_p4, %p2675_p13  ;;  %p2720_p5 = por %p2719_p3, %p2718_p1 }
  0x22   : > { %p2714_p0 = pneg %p2713_p10 }
  0x24   : > { %p2721_p2 = pnand %p2720_p5, %p2714_p0 }
  0x26   : > { %2724 = shalt.err (!%p2721_p2)
}
  0x27   : > { %2474 = dma.hbm_to_vmem [thread:$0]  (!%p2933_p11), %s3547_s1, 1024, %s176_s5, [#allocation6], %s2845_s7, %s2845_s7, %s2846_s8  }
  0x28   : > { %s2847_s14 = smov [#allocation8]  }
  0x29   : > { %s189_s15 = sshll.u32 %s2847_s14, 4  ;;  %s190_s15 = int_to_ptr.vmem [resolvable:$true] %s189_s15 }
  0x2a   : > { %s2736_s26 = scalar_lea.vmem %s190_s15, 16  ;;  %s2743_s27 = scalar_lea.vmem %s190_s15, 32 }
  0x2b   : > { %p2737_p6 = scmp.ne.s32.totalorder %s190_s15, %s2736_s26  ;;  %p2744_p3 = scmp.lt.s32.totalorder %s190_s15, %s190_s15 }
  0x2c   : > { %p2745_p4 = scmp.lt.s32.totalorder %s2743_s27, %s2736_s26 }
  0x2d   : > { %p2739_p7 = pnand %p2737_p6, %p2675_p13 }
  0x2e   : > { %p2746_p10 = por %p2745_p4, %p2744_p3 }
  0x2f   : > { %p2740_p9 = pneg %p2739_p7 }
  0x31   : > { %p2747_p0 = pnand %p2746_p10, %p2740_p9 }
  0x33   : > { %2750 = shalt.err (!%p2747_p0)
}
  0x34   : > { %2477 = dma.hbm_to_vmem [thread:$0]  (!%p2933_p11), %s3549_s3, 16, %s190_s15, [#allocation6]  }
  0x35   : > { %s28_s5 = sadd.s32 1, %s2837_s19  ;;  %s200_s7 = sand.u32 1, %s2841_s20  }
  0x36   : > { %p30_p13 = scmp.ge.s32.totalorder %s28_s5, 2  ;;  %s202_s8 = sand.u32 1, %s2829_s17  }
  0x37   : > { %s2451_s28 = smul.u32 288, %s202_s8  ;;  %s201_s27 = scalar_lea.sflag [#allocation4], %s200_s7 }
  0x38   : > { %s3588_s5 = smov (%p30_p13, %s28_s5), 0  ;;  %s2486_s10 = smul.u32 4608, %s2837_s19 }
  0x39   : > { %s74_s9 = ssub.s32 %s2837_s19, %s3588_s5  ;;  %s204_s14 = scalar_lea.vmem [#allocation7], %s2451_s28 }
  0x3a   : > { %p77_p1 = scmp.eq.s32.totalorder %s74_s9, 0  ;;  %s213_s13 = scalar_lea.hbm %s3548_s2, %s2486_s10 }
  0x3b   : > { %s214_s26 = sshll.u32 %s204_s14, 4  ;;  %p2753_p11 = pneg %p2937_p12  ;;  %s215_s26 = int_to_ptr.vmem [resolvable:$true] %s214_s26 }
  0x3c   : > { %s2981_s15 = scalar_select %p77_p1, %s2829_s17, %s79_s22  }
  0x3d   : > { %s2764_s30 = scalar_lea.vmem %s215_s26, 4608  ;;  %s2848_s6 = smov [#allocation7]  }
  0x3e   : > { %p2765_p5 = scmp.ne.s32.totalorder %s215_s26, %s2764_s30  ;;  %s2769_s8 = sshll.u32 %s2848_s6, 4  ;;  %s2770_s8 = int_to_ptr.vmem [resolvable:$false] %s2769_s8 }
  0x3f   : > { %s2771_s9 = scalar_lea.vmem %s2770_s8, 9216  ;;  %p2772_p7 = scmp.lt.s32.totalorder %s215_s26, %s2770_s8 }
  0x40   : > { %p2767_p2 = pnand %p2765_p5, %p2753_p11  ;;  %p2773_p9 = scmp.lt.s32.totalorder %s2771_s9, %s2764_s30 }
  0x42   : > { %p2768_p6 = pneg %p2767_p2  ;;  %p2774_p3 = por %p2773_p9, %p2772_p7 }
  0x44   : > { %p2775_p4 = pnand %p2774_p3, %p2768_p6 }
  0x46   : > { %2778 = shalt.err (!%p2775_p4)
}
  0x47   : > { %s2849_s28 = smov 192   ;;  %s2850_s22 = smov 12  }
  0x48   : > { %2481 = dma.hbm_to_vmem [thread:$0]  (!%p2937_p12), %s213_s13, 4608, %s215_s26, %s201_s27, %s2849_s28, %s2849_s28, %s2850_s22  }
  0x49   : > { %226 = sbr.rel (%p2924_p8) target bundleno = 894 (0x37e), region = 36  ;;  %p3569_p10 = scmp.ne.s32.totalorder (!%p2924_p8), %s3564_s23, 0 }
  0x4e   : > { %2804 = dma.done.wait (%p3569_p10), [#allocation4], 3072  }
  0x4f   : > { %2806 = vsyncadd (%p3569_p10), [#allocation4], 4294964224 }
  0x50   : > { %2808 = dma.done.wait (%p3569_p10), [#allocation6], 1024  }
  0x51   : > { %2810 = vsyncadd (%p3569_p10), [#allocation6], 4294966272  ;;  %s236_s29 = sand.u32 1, %s1988_s21   ;;  %s238_s7 = sand.u32 1, %s2825_s16  }
  0x52   : > { %s2453_s25 = smul.u32 288, %s238_s7  ;;  %s237_s10 = scalar_lea.sflag [#allocation4], %s236_s29 }
  0x53   : > { %p3570_p8 = scmp.ne.s32.totalorder %s3565_s24, 0 }
  0x54   : > { %s3000_s11 = scalar_lea.vmem [#allocation7], %s2453_s25 }
  0x55   : > { %2812 = dma.done.wait (%p3570_p8), %s237_s10, 4608  }
  0x56   : > { %2814 = vsyncadd (%p3570_p8), %s237_s10, 4294962688 }
  0x57   : > { %2816 = dma.done.wait (%p3569_p10), [#allocation6], 16  }
  0x58   : > { %2818 = vsyncadd (%p3569_p10), [#allocation6], 4294967280  ;;  %v2545_v0 = vld [vmem:[#allocation5 + $0x38] sm:$0xff]   ;;  %v2546_v1 = vld [vmem:[#allocation5 + $0x30] sm:$0xff]   ;;  %s271_s21 = smul.u32 24, %s2833_s18 }
  0x59   : > { %2331 = vmatprep.subr.bf16.mxu0 %v2545_v0  ;;  %v2547_v2 = vld [vmem:[#allocation5 + $0x28] sm:$0xff]   ;;  %v2548_v3 = vld [vmem:[#allocation5 + $0x20] sm:$0xff]   ;;  %v2549_v5 = vld [vmem:[#allocation5 + $0x18] sm:$0xff]  }
  0x5a   : > { %2332 = vmatpush3.bf16.msra.mxu0 %v2545_v0  ;;  %v2553_v4 = vld [vmem:[#allocation3] sm:$0xff]   ;;  %v2550_v6 = vld [vmem:[#allocation5 + $0x10] sm:$0xff]   ;;  %v2551_v7 = vld [vmem:[#allocation5 + $0x8] sm:$0xff]   ;;  %p272_p12 = scmp.lt.s32.totalorder %s271_s21, 47 }
  0x5b   : > { %2333 = vmatprep.subr.bf16.mxu0 %v2546_v1  ;;  %2347 = vmatprep.mubr.bf16.mxu0 %v2553_v4  ;;  %v2552_v8 = vld [vmem:[#allocation5] sm:$0xff]   ;;  %v2554_v9 = vld [vmem:[#allocation3 + $0x8] sm:$0xff]   ;;  %v2555_v10 = vld [vmem:[#allocation3 + $0x10] sm:$0xff]  }
  0x5c   : > { %v2556_v11 = vld [vmem:[#allocation3 + $0x18] sm:$0xff]   ;;  %v2557_v12 = vld [vmem:[#allocation3 + $0x20] sm:$0xff]   ;;  %v2558_v13 = vld [vmem:[#allocation3 + $0x28] sm:$0xff]   ;;  %s3590_s21 = smov (!%p272_p12, %s271_s21), 47 }
  0x5d   : > { %v2559_v14 = vld [vmem:[#allocation3 + $0x30] sm:$0xff]   ;;  %v2560_v15 = vld [vmem:[#allocation3 + $0x38] sm:$0xff]   ;;  %v2561_v16 = vld [vmem:[#allocation3 + $0x40] sm:$0xff]   ;;  %s2000_s18 = sshll.u32 %s3590_s21, 2 }
  0x5e   : > { %2334 = vmatpush3.bf16.msra.mxu0 %v2546_v1  ;;  %v2562_v17 = vld [vmem:[#allocation3 + $0x48] sm:$0xff]   ;;  %v2563_v18 = vld [vmem:[#allocation3 + $0x50] sm:$0xff]   ;;  %v2564_v19 = vld [vmem:[#allocation3 + $0x58] sm:$0xff]   ;;  %s3317_s12 = scalar_lea.vmem %s3550_s4, %s2000_s18 }
  0x5f   : > { %2335 = vmatprep.subr.bf16.mxu0 %v2547_v2  ;;  %v2565_v20 = vld [vmem:[#allocation3 + $0x60] sm:$0xff]   ;;  %v2566_v21 = vld [vmem:[#allocation3 + $0x68] sm:$0xff]   ;;  %v2567_v22 = vld [vmem:[#allocation3 + $0x70] sm:$0xff]  }
  0x60   : > { %v2568_v23 = vld [vmem:[#allocation3 + $0x78] sm:$0xff]   ;;  %v2569_v24 = vld [vmem:[#allocation3 + $0x80] sm:$0xff]   ;;  %v2570_v25 = vld [vmem:[#allocation3 + $0x88] sm:$0xff]  }
  0x61   : > { %v2571_v26 = vld [vmem:[#allocation3 + $0x90] sm:$0xff]   ;;  %v2572_v27 = vld [vmem:[#allocation3 + $0x98] sm:$0xff]   ;;  %v2573_v28 = vld [vmem:[#allocation3 + $0xa0] sm:$0xff]  }
  0x62   : > { %2336 = vmatpush3.bf16.msra.mxu0 %v2547_v2  ;;  %v2574_v29 = vld [vmem:[#allocation3 + $0xa8] sm:$0xff]   ;;  %v2575_v30 = vld [vmem:[#allocation3 + $0xb0] sm:$0xff]   ;;  %v2576_v31 = vld [vmem:[#allocation3 + $0xb8] sm:$0xff]  }
  0x63   : > { %2337 = vmatprep.subr.bf16.mxu0 %v2548_v3  ;;  %v2579_v32 = vld [vmem:[%s3000_s11 + $0x4] ss:$12 sps:$4 sm:$0xff]   ;;  %v2591_v33 = vld [vmem:[%s3000_s11 + $0x8] ss:$12 sps:$4 sm:$0xff]  }
  0x64   : > { %1119 = vmatprep.mubr.bf16.mxu1 %v2579_v32  ;;  %v2577_v32 = vld [vmem:[%s3000_s11] ss:$12 sps:$4 sm:$0xff]  }
  0x66   : > { %2338 = vmatpush3.bf16.msra.mxu0 %v2548_v3 }
  0x67   : > { %2339 = vmatprep.subr.bf16.mxu0 %v2549_v5 }
  0x6a   : > { %2340 = vmatpush3.bf16.msra.mxu0 %v2549_v5 }
  0x6b   : > { %2341 = vmatprep.subr.bf16.mxu0 %v2550_v6 }
  0x6e   : > { %2342 = vmatpush3.bf16.msra.mxu0 %v2550_v6 }
  0x6f   : > { %2343 = vmatprep.subr.bf16.mxu0 %v2551_v7 }
  0x72   : > { %2344 = vmatpush3.bf16.msra.mxu0 %v2551_v7 }
  0x73   : > { %2345 = vmatprep.subr.bf16.mxu0 %v2552_v8 }
  0x76   : > { %2346 = vmatpush3.bf16.msra.mxu0 %v2552_v8 }
  0x79   : > { %2348 = vmatmul.mubr.bf16.vlgmr.msra.gmra.mxu0 %v2554_v9 }
  0x7a   : > { %2351 = vmatprep.mubr.bf16.mxu0 %v2555_v10 }
  0x81   : > { %2352 = vmatmul.mubr.bf16.gmra.mxu0 %v2556_v11 }
  0x82   : > { %2355 = vmatprep.mubr.bf16.mxu0 %v2557_v12 }
  0x89   : > { %2356 = vmatmul.mubr.bf16.gmra.mxu0 %v2558_v13 }
  0x8a   : > { %2359 = vmatprep.mubr.bf16.mxu0 %v2559_v14 }
  0x91   : > { %2360 = vmatmul.mubr.bf16.gmra.mxu0 %v2560_v15 }
  0x92   : > { %2363 = vmatprep.mubr.bf16.mxu0 %v2561_v16 }
  0x99   : > { %2364 = vmatmul.mubr.bf16.gmra.mxu0 %v2562_v17 }
  0x9a   : > { %2367 = vmatprep.mubr.bf16.mxu0 %v2563_v18 }
  0xa1   : > { %2368 = vmatmul.mubr.bf16.gmra.mxu0 %v2564_v19 }
  0xa2   : > { %2371 = vmatprep.mubr.bf16.mxu0 %v2565_v20 }
  0xa9   : > { %2372 = vmatmul.mubr.bf16.gmra.mxu0 %v2566_v21 }
  0xaa   : > { %2375 = vmatprep.mubr.bf16.mxu0 %v2567_v22 }
  0xb1   : > { %2376 = vmatmul.mubr.bf16.gmra.mxu0 %v2568_v23 }
  0xb2   : > { %2379 = vmatprep.mubr.bf16.mxu0 %v2569_v24 }
  0xb9   : > { %2380 = vmatmul.mubr.bf16.gmra.mxu0 %v2570_v25 }
  0xba   : > { %2383 = vmatprep.mubr.bf16.mxu0 %v2571_v26 }
  0xc1   : > { %2384 = vmatmul.mubr.bf16.gmra.mxu0 %v2572_v27 }
  0xc2   : > { %2387 = vmatprep.mubr.bf16.mxu0 %v2573_v28 }
  0xc9   : > { %2388 = vmatmul.mubr.bf16.gmra.mxu0 %v2574_v29 }
  0xca   : > { %2391 = vmatprep.mubr.bf16.mxu0 %v2575_v30 }
  0xd1   : > { %2392 = vmatmul.mubr.bf16.gmra.mxu0 %v2576_v31 }
  0xd2   : > { %2411 = vmatprep.mubr.bf16.mxu0 %v2591_v33 }
 0x139   : > { %v3012_v34 = vpop.f32.mrf.mxu0 }
 0x13b   : > { %v3014_v35 = vpop.f32.mrf.mxu0 }
 0x13d   : > { %v3016_v36 = vpop.f32.mrf.mxu0 }
 0x13e   : > { %v872_v37 = vpack.c.bf16 %v3016_v36, %v3012_v34  ;;  %v2582_v36 = vld [vmem:[%s3000_s11 + $0x18] ss:$12 sps:$4 sm:$0xff]  }
 0x13f   : > { %v3020_v38 = vpop.f32.mrf.mxu0 }
 0x140   : > { %v871_v39 = vpack.c.bf16 %v3020_v38, %v3014_v35  ;;  %v2583_v35 = vld [vmem:[%s3000_s11 + $0x34] ss:$12 sps:$4 sm:$0xff]  }
 0x141   : > { %v2353_v40 = vpop.f32.mrf.mxu0 }
 0x143   : > { %v624_v41 = vpop.f32.mrf.mxu0 }
 0x145   : > { %v2354_v42 = vpop.f32.mrf.mxu0 }
 0x146   : > { %v874_v43 = vpack.c.bf16 %v2354_v42, %v2353_v40  ;;  %v2580_v42 = vld [vmem:[%s3000_s11 + $0x1c] ss:$12 sps:$4 sm:$0xff]  }
 0x147   : > { %v627_v44 = vpop.f32.mrf.mxu0 }
 0x148   : > { %v873_v45 = vpack.c.bf16 %v627_v44, %v624_v41  ;;  %v2586_v44 = vld [vmem:[%s3000_s11 + $0x4c] ss:$12 sps:$4 sm:$0xff]  }
 0x149   : > { %v2357_v46 = vpop.f32.mrf.mxu0 }
 0x14b   : > { %v640_v47 = vpop.f32.mrf.mxu0 }
 0x14d   : > { %v2358_v48 = vpop.f32.mrf.mxu0 }
 0x14e   : > { %v876_v14 = vpack.c.bf16 %v2358_v48, %v2357_v46  ;;  %v2589_v48 = vld [vmem:[%s3000_s11 + $0x64] ss:$12 sps:$4 sm:$0xff]  }
 0x14f   : > { %v643_v49 = vpop.f32.mrf.mxu0 }
 0x150   : > { %v875_v18 = vpack.c.bf16 %v643_v49, %v640_v47  ;;  %v2588_v47 = vld [vmem:[%s3000_s11 + $0x48] ss:$12 sps:$4 sm:$0xff]  }
 0x151   : > { %v2361_v50 = vpop.f32.mrf.mxu0 }
 0x153   : > { %v656_v51 = vpop.f32.mrf.mxu0 }
 0x155   : > { %v2362_v52 = vpop.f32.mrf.mxu0 }
 0x156   : > { %v878_v6 = vpack.c.bf16 %v2362_v52, %v2361_v50  ;;  %v2592_v50 = vld [vmem:[%s3000_s11 + $0x60] ss:$12 sps:$4 sm:$0xff]   ;;  %v2594_v52 = vld [vmem:[%s3000_s11 + $0x7c] ss:$12 sps:$4 sm:$0xff]  }
 0x157   : > { %v659_v53 = vpop.f32.mrf.mxu0 }
 0x158   : > { %v877_v10 = vpack.c.bf16 %v659_v53, %v656_v51  ;;  %v2593_v51 = vld [vmem:[%s3000_s11 + $0x20] ss:$12 sps:$4 sm:$0xff]   ;;  %v2596_v53 = vld [vmem:[%s3000_s11 + $0x38] ss:$12 sps:$4 sm:$0xff]  }
 0x159   : > { %v2365_v54 = vpop.f32.mrf.mxu0 }
 0x15b   : > { %v672_v55 = vpop.f32.mrf.mxu0 }
 0x15d   : > { %v2366_v56 = vpop.f32.mrf.mxu0 }
 0x15e   : > { %v880_v26 = vpack.c.bf16 %v2366_v56, %v2365_v54  ;;  %v2597_v54 = vld [vmem:[%s3000_s11 + $0x78] ss:$12 sps:$4 sm:$0xff]   ;;  %v2599_v56 = vld [vmem:[%s3000_s11 + $0x94] ss:$12 sps:$4 sm:$0xff]  }
 0x15f   : > { %v675_v57 = vpop.f32.mrf.mxu0 }
 0x160   : > { %v879_v29 = vpack.c.bf16 %v675_v57, %v672_v55  ;;  %v2598_v55 = vld [vmem:[%s3000_s11 + $0x50] ss:$12 sps:$4 sm:$0xff]   ;;  %v2601_v57 = vld [vmem:[%s3000_s11 + $0x68] ss:$12 sps:$4 sm:$0xff]  }
 0x161   : > { %v2369_v58 = vpop.f32.mrf.mxu0 }
 0x163   : > { %v688_v59 = vpop.f32.mrf.mxu0 }
 0x165   : > { %v2370_v60 = vpop.f32.mrf.mxu0 }
 0x166   : > { %v882_v20 = vpack.c.bf16 %v2370_v60, %v2369_v58  ;;  %v2602_v58 = vld [vmem:[%s3000_s11 + $0x90] ss:$12 sps:$4 sm:$0xff]   ;;  %v2604_v60 = vld [vmem:[%s3000_s11 + $0xac] ss:$12 sps:$4 sm:$0xff]  }
 0x167   : > { %v691_v61 = vpop.f32.mrf.mxu0 }
 0x168   : > { %v881_v23 = vpack.c.bf16 %v691_v61, %v688_v59  ;;  %v2603_v59 = vld [vmem:[%s3000_s11 + $0x80] ss:$12 sps:$4 sm:$0xff]   ;;  %v2606_v61 = vld [vmem:[%s3000_s11 + $0xa8] ss:$12 sps:$4 sm:$0xff]  }
 0x169   : > { %v2373_v62 = vpop.f32.mrf.mxu0 }
 0x16b   : > { %v704_v63 = vpop.f32.mrf.mxu0 }
 0x16d   : > { %v2374_v0 = vpop.f32.mrf.mxu0 }
 0x16e   : > { %v884_v12 = vpack.c.bf16 %v2374_v0, %v2373_v62  ;;  %v2607_v62 = vld [vmem:[%s3000_s11 + $0xc4] ss:$12 sps:$4 sm:$0xff]   ;;  %v2610_v0 = vld [vmem:[%s3000_s11 + $0xdc] ss:$12 sps:$4 sm:$0xff]  }
 0x16f   : > { %v707_v1 = vpop.f32.mrf.mxu0 }
 0x170   : > { %v883_v16 = vpack.c.bf16 %v707_v1, %v704_v63  ;;  %v2609_v63 = vld [vmem:[%s3000_s11 + $0xc0] ss:$12 sps:$4 sm:$0xff]   ;;  %v2612_v1 = vld [vmem:[%s3000_s11 + $0xd8] ss:$12 sps:$4 sm:$0xff]  }
 0x171   : > { %v2377_v2 = vpop.f32.mrf.mxu0 }
 0x173   : > { %v720_v3 = vpop.f32.mrf.mxu0 }
 0x175   : > { %v2378_v4 = vpop.f32.mrf.mxu0 }
 0x176   : > { %v886_v5 = vpack.c.bf16 %v2378_v4, %v2377_v2  ;;  %v2613_v2 = vld [vmem:[%s3000_s11 + $0xf4] ss:$12 sps:$4 sm:$0xff]   ;;  %v2616_v4 = vld [vmem:[%s3000_s11 + $0x10c] ss:$12 sps:$4 sm:$0xff]  }
 0x177   : > { %v723_v7 = vpop.f32.mrf.mxu0 }
 0x178   : > { %v885_v8 = vpack.c.bf16 %v723_v7, %v720_v3  ;;  %2223 = vmatprep.subr.bf16.mxu1 %v886_v5  ;;  %v2615_v3 = vld [vmem:[%s3000_s11 + $0xf0] ss:$12 sps:$4 sm:$0xff]   ;;  %v2618_v5 = vld [vmem:[%s3000_s11 + $0x108] ss:$12 sps:$4 sm:$0xff]  }
 0x179   : > { %v3024_v9 = vpop.f32.mrf.mxu0  ;;  %2224 = vmatpush3.bf16.msra.mxu1 %v878_v6  ;;  %v2619_v6 = vld [vmem:[%s3000_s11 + $0x98] ss:$12 sps:$4 sm:$0xff]   ;;  %v2620_v7 = vld [vmem:[%s3000_s11 + $0xb0] ss:$12 sps:$4 sm:$0xff]  }
 0x17a   : > { %2225 = vmatprep.subr.bf16.mxu1 %v885_v8  ;;  %v2621_v8 = vld [vmem:[%s3000_s11 + $0xc8] ss:$12 sps:$4 sm:$0xff]  }
 0x17b   : > { %v3026_v11 = vpop.f32.mrf.mxu0 }
 0x17d   : > { %v3028_v13 = vpop.f32.mrf.mxu0  ;;  %2226 = vmatpush3.bf16.msra.mxu1 %v877_v10  ;;  %v2623_v10 = vld [vmem:[%s3000_s11 + $0xf8] ss:$12 sps:$4 sm:$0xff]  }
 0x17e   : > { %2227 = vmatprep.subr.bf16.mxu1 %v884_v12  ;;  %v888_v46 = vpack.c.bf16 %v3028_v13, %v3024_v9  ;;  %v2622_v9 = vld [vmem:[%s3000_s11 + $0xe0] ss:$12 sps:$4 sm:$0xff]  }
 0x17f   : > { %v3030_v15 = vpop.f32.mrf.mxu0 }
 0x180   : > { %v887_v49 = vpack.c.bf16 %v3030_v15, %v3026_v11  ;;  %v2624_v11 = vld [vmem:[%s3000_s11 + $0x110] ss:$12 sps:$4 sm:$0xff]  }
 0x181   : > { %v2385_v17 = vpop.f32.mrf.mxu0  ;;  %2228 = vmatpush3.bf16.msra.mxu1 %v876_v14 }
 0x182   : > { %2229 = vmatprep.subr.bf16.mxu1 %v883_v16 }
 0x183   : > { %v752_v19 = vpop.f32.mrf.mxu0 }
 0x185   : > { %v2386_v21 = vpop.f32.mrf.mxu0  ;;  %2230 = vmatpush3.bf16.msra.mxu1 %v875_v18 }
 0x186   : > { %2231 = vmatprep.subr.bf16.mxu1 %v882_v20  ;;  %v890_v38 = vpack.c.bf16 %v2386_v21, %v2385_v17 }
 0x187   : > { %v755_v22 = vpop.f32.mrf.mxu0 }
 0x189   : > { %v2389_v24 = vpop.f32.mrf.mxu0  ;;  %2232 = vmatpush3.bf16.msra.mxu1 %v874_v43 }
 0x18a   : > { %2233 = vmatprep.subr.bf16.mxu1 %v881_v23 }
 0x18b   : > { %v768_v25 = vpop.f32.mrf.mxu0 }
 0x18d   : > { %v2390_v27 = vpop.f32.mrf.mxu0  ;;  %2234 = vmatpush3.bf16.msra.mxu1 %v873_v45  ;;  %v889_v45 = vpack.c.bf16 %v755_v22, %v752_v19 }
 0x18e   : > { %2235 = vmatprep.subr.bf16.mxu1 %v880_v26  ;;  %v892_v34 = vpack.c.bf16 %v2390_v27, %v2389_v24  ;;  %v1444_v27 = vlaneseq }
 0x18f   : > { %v771_v28 = vpop.f32.mrf.mxu0 }
 0x191   : > { %v2393_v30 = vpop.f32.mrf.mxu0  ;;  %2236 = vmatpush3.bf16.msra.mxu1 %v872_v37  ;;  %v891_v37 = vpack.c.bf16 %v771_v28, %v768_v25 }
 0x192   : > { %2237 = vmatprep.subr.bf16.mxu1 %v879_v29 }
 0x193   : > { %v784_v31 = vpop.f32.mrf.mxu0 }
 0x195   : > { %v2394_v33 = vpop.f32.mrf.mxu0  ;;  %2238 = vmatpush3.bf16.msra.mxu1 %v871_v39  ;;  %v2585_v39 = vld [vmem:[%s3000_s11 + $0x30] ss:$12 sps:$4 sm:$0xff]  }
 0x196   : > { %v894_v40 = vpack.c.bf16 %v2394_v33, %v2393_v30  ;;  %v3078_v33 = vand.u32 127, %v1444_v27 }
 0x197   : > { %v787_v41 = vpop.f32.mrf.mxu0 }
 0x198   : > { %v893_v43 = vpack.c.bf16 %v787_v41, %v784_v31  ;;  %1120 = vmatmul.mubr.bf16.vlgmr.msra.gmra.mxu1 %v2577_v32  ;;  %2395 = vmatprep.subr.bf16.mxu0 %v894_v40  ;;  %v3076_v31 = vld [vmem:[#allocation8] ss:$0 sm:$0xff]  ;;  %vm1446_vm0 = vcmp.eq.s32.totalorder %v3078_v33, 0 }
 0x199   : > { %2435 = vmatprep.subr.bf16.mxu1 %v894_v40  ;;  %2396 = vmatpush3.bf16.msra.mxu0 %v894_v40 }
 0x19a   : > { %2443 = vmatpush3.bf16.msra.mxu1 %v894_v40  ;;  %2397 = vmatprep.subr.bf16.mxu0 %v893_v43 }
 0x19b   : > { %2436 = vmatprep.subr.bf16.mxu1 %v893_v43  ;;  %1127 = vmatprep.mubr.bf16.mxu1 %v2580_v42 }
 0x19d   : > { %2398 = vmatpush3.bf16.msra.mxu0 %v893_v43 }
 0x19e   : > { %2444 = vmatpush3.bf16.msra.mxu1 %v893_v43  ;;  %2399 = vmatprep.subr.bf16.mxu0 %v892_v34 }
 0x19f   : > { %2437 = vmatprep.subr.bf16.mxu1 %v892_v34 }
 0x1a0   : > { %1128 = vmatmul.mubr.bf16.gmra.mxu1 %v2582_v36 }
 0x1a1   : > { %2400 = vmatpush3.bf16.msra.mxu0 %v892_v34  ;;  %1135 = vmatprep.mubr.bf16.mxu1 %v2583_v35 }
 0x1a2   : > { %2445 = vmatpush3.bf16.msra.mxu1 %v892_v34  ;;  %2401 = vmatprep.subr.bf16.mxu0 %v891_v37 }
 0x1a3   : > { %2438 = vmatprep.subr.bf16.mxu1 %v891_v37 }
 0x1a5   : > { %2402 = vmatpush3.bf16.msra.mxu0 %v891_v37 }
 0x1a6   : > { %2446 = vmatpush3.bf16.msra.mxu1 %v891_v37  ;;  %2403 = vmatprep.subr.bf16.mxu0 %v890_v38 }
 0x1a7   : > { %2439 = vmatprep.subr.bf16.mxu1 %v890_v38 }
 0x1a8   : > { %1136 = vmatmul.mubr.bf16.gmra.mxu1 %v2585_v39 }
 0x1a9   : > { %2404 = vmatpush3.bf16.msra.mxu0 %v890_v38  ;;  %1143 = vmatprep.mubr.bf16.mxu1 %v2586_v44 }
 0x1aa   : > { %2447 = vmatpush3.bf16.msra.mxu1 %v890_v38  ;;  %2405 = vmatprep.subr.bf16.mxu0 %v889_v45 }
 0x1ab   : > { %2440 = vmatprep.subr.bf16.mxu1 %v889_v45 }
 0x1ad   : > { %2406 = vmatpush3.bf16.msra.mxu0 %v889_v45 }
 0x1ae   : > { %2448 = vmatpush3.bf16.msra.mxu1 %v889_v45  ;;  %2407 = vmatprep.subr.bf16.mxu0 %v888_v46 }
 0x1af   : > { %2441 = vmatprep.subr.bf16.mxu1 %v888_v46 }
 0x1b0   : > { %1144 = vmatmul.mubr.bf16.gmra.mxu1 %v2588_v47 }
 0x1b1   : > { %2408 = vmatpush3.bf16.msra.mxu0 %v888_v46  ;;  %1151 = vmatprep.mubr.bf16.mxu1 %v2589_v48 }
 0x1b2   : > { %2449 = vmatpush3.bf16.msra.mxu1 %v888_v46  ;;  %2409 = vmatprep.subr.bf16.mxu0 %v887_v49 }
 0x1b3   : > { %2442 = vmatprep.subr.bf16.mxu1 %v887_v49 }
 0x1b5   : > { %2410 = vmatpush3.bf16.msra.mxu0 %v887_v49 }
 0x1b6   : > { %2450 = vmatpush3.bf16.msra.mxu1 %v887_v49 }
 0x1b8   : > { %1152 = vmatmul.mubr.bf16.gmra.mxu1 %v2592_v50  ;;  %2412 = vmatmul.mubr.bf16.vlgmr.msra.gmra.mxu0 %v2593_v51 }
 0x1b9   : > { %1159 = vmatprep.mubr.bf16.mxu1 %v2594_v52  ;;  %2415 = vmatprep.mubr.bf16.mxu0 %v2596_v53 }
 0x1c0   : > { %1160 = vmatmul.mubr.bf16.gmra.mxu1 %v2597_v54  ;;  %2416 = vmatmul.mubr.bf16.gmra.mxu0 %v2598_v55 }
 0x1c1   : > { %1167 = vmatprep.mubr.bf16.mxu1 %v2599_v56  ;;  %2419 = vmatprep.mubr.bf16.mxu0 %v2601_v57 }
 0x1c8   : > { %1168 = vmatmul.mubr.bf16.gmra.mxu1 %v2602_v58  ;;  %2420 = vmatmul.mubr.bf16.gmra.mxu0 %v2603_v59 }
 0x1c9   : > { %1175 = vmatprep.mubr.bf16.mxu1 %v2604_v60 }
 0x1d0   : > { %1176 = vmatmul.mubr.bf16.gmra.mxu1 %v2606_v61 }
 0x1d1   : > { %1183 = vmatprep.mubr.bf16.mxu1 %v2607_v62 }
 0x1d8   : > { %1184 = vmatmul.mubr.bf16.gmra.mxu1 %v2609_v63 }
 0x1d9   : > { %1191 = vmatprep.mubr.bf16.mxu1 %v2610_v0 }
 0x1e0   : > { %1192 = vmatmul.mubr.bf16.gmra.mxu1 %v2612_v1 }
 0x1e1   : > { %1199 = vmatprep.mubr.bf16.mxu1 %v2613_v2 }
 0x1e8   : > { %1200 = vmatmul.mubr.bf16.gmra.mxu1 %v2615_v3 }
 0x1e9   : > { %1207 = vmatprep.mubr.bf16.mxu1 %v2616_v4 }
 0x1f0   : > { %1208 = vmatmul.mubr.bf16.gmra.mxu1 %v2618_v5 }
 0x1f1   : > { %2423 = vmatprep.mubr.bf16.mxu1 %v2619_v6 }
 0x1f8   : > { %2424 = vmatmul.mubr.bf16.vlgmr.msra.gmra.mxu1 %v2620_v7 }
 0x1f9   : > { %2427 = vmatprep.mubr.bf16.mxu1 %v2621_v8 }
 0x200   : > { %2428 = vmatmul.mubr.bf16.gmra.mxu1 %v2622_v9 }
 0x201   : > { %2431 = vmatprep.mubr.bf16.mxu1 %v2623_v10 }
 0x208   : > { %2432 = vmatmul.mubr.bf16.gmra.mxu1 %v2624_v11 }
 0x258   : > { %v2239_v12 = vpop.f32.mrf.mxu1 }
 0x25a   : > { %v2240_v13 = vpop.f32.mrf.mxu1 }
 0x25b   : > { %v2241_v40 = vadd.f32 %v2240_v13, %v2239_v12 }
 0x25c   : > { %v2242_v14 = vpop.f32.mrf.mxu1 }
 0x25e   : > { %v2243_v15 = vpop.f32.mrf.mxu1 }
 0x25f   : > { %v2244_v39 = vadd.f32 %v2243_v15, %v2242_v14 }
 0x260   : > { %v2245_v16 = vpop.f32.mrf.mxu1 }
 0x262   : > { %v2246_v17 = vpop.f32.mrf.mxu1 }
 0x263   : > { %v2247_v29 = vadd.f32 %v2246_v17, %v2245_v16 }
 0x264   : > { %v2248_v18 = vpop.f32.mrf.mxu1 }
 0x266   : > { %v2249_v19 = vpop.f32.mrf.mxu1 }
 0x267   : > { %v2250_v34 = vadd.f32 %v2249_v19, %v2248_v18 }
 0x268   : > { %v2251_v20 = vpop.f32.mrf.mxu1 }
 0x26a   : > { %v2252_v21 = vpop.f32.mrf.mxu1 }
 0x26b   : > { %v2253_v57 = vadd.f32 %v2252_v21, %v2251_v20 }
 0x26c   : > { %v2254_v22 = vpop.f32.mrf.mxu1 }
 0x26e   : > { %v2255_v23 = vpop.f32.mrf.mxu1 }
 0x26f   : > { %v2256_v4 = vadd.f32 %v2255_v23, %v2254_v22 }
 0x270   : > { %v2257_v24 = vpop.f32.mrf.mxu1 }
 0x272   : > { %v2258_v25 = vpop.f32.mrf.mxu1 }
 0x273   : > { %v2259_v49 = vadd.f32 %v2258_v25, %v2257_v24 }
 0x274   : > { %v2260_v26 = vpop.f32.mrf.mxu1 }
 0x276   : > { %v2261_v28 = vpop.f32.mrf.mxu1 }
 0x277   : > { %v2262_v0 = vadd.f32 %v2261_v28, %v2260_v26 }
 0x278   : > { %v2263_v30 = vpop.f32.mrf.mxu1  ;;  %v2413_v32 = vpop.f32.mrf.mxu0 }
 0x279   : > { %v1259_v41 = vadd.f32 %v2413_v32, %v2247_v29 }
 0x27a   : > { %v2264_v42 = vpop.f32.mrf.mxu1  ;;  %v1250_v43 = vpop.f32.mrf.mxu0 }
 0x27b   : > { %v3081_v36 = vadd.f32 %v3076_v31, %v1259_v41  ;;  %v1251_v35 = vadd.f32 %v2241_v40, %v1250_v43  ;;  %v2265_v19 = vadd.f32 %v2264_v42, %v2263_v30 }
 0x27c   : > { %v2266_v37 = vpop.f32.mrf.mxu1  ;;  %v2414_v38 = vpop.f32.mrf.mxu0 }
 0x27d   : > { %v3085_v44 = vadd.f32 %v3076_v31, %v1251_v35  ;;  %v1262_v45 = vadd.f32 %v2414_v38, %v2250_v34  ;;  %v1422_v46 = vmax.f32 %v3081_v36, 0.0 }
 0x27e   : > { %v2267_v47 = vpop.f32.mrf.mxu1  ;;  %v1253_v48 = vpop.f32.mrf.mxu0 }
 0x27f   : > { %v3089_v50 = vadd.f32 %v3076_v31, %v1262_v45  ;;  %v1254_v51 = vadd.f32 %v2244_v39, %v1253_v48  ;;  %v1449_v52 = vsel %vm1446_vm0, 0.0, %v1422_v46  ;;  %v1420_v56 = vmax.f32 %v3085_v44, 0.0 }
 0x280   : > { %v2269_v53 = vpop.f32.mrf.mxu1  ;;  %v2417_v54 = vpop.f32.mrf.mxu0  ;;  %v1473_v55 = vmul.f32 %v1449_v52, %v1449_v52  ;;  %v2268_v42 = vadd.f32 %v2267_v47, %v2266_v37 }
 0x281   : > { %v1423_v58 = vmax.f32 %v3089_v50, 0.0  ;;  %v3098_v59 = vadd.f32 %v3076_v31, %v1254_v51  ;;  %v1275_v60 = vadd.f32 %v2417_v54, %v2259_v49  ;;  %v1447_v63 = vsel %vm1446_vm0, 0.0, %v1420_v56 }
 0x282   : > { %v2270_v61 = vpop.f32.mrf.mxu1  ;;  %v1266_v62 = vpop.f32.mrf.mxu0  ;;  %1499 = vadd.xlane.f32.xlu1 %v1473_v55  ;;  %v1471_v7 = vmul.f32 %v1447_v63, %v1447_v63 }
 0x283   : > { %v1421_v1 = vmax.f32 %v3098_v59, 0.0  ;;  %v3106_v2 = vadd.f32 %v3076_v31, %v1275_v60  ;;  %v1267_v3 = vadd.f32 %v2253_v57, %v1266_v62  ;;  %v1450_v8 = vsel %vm1446_vm0, 0.0, %v1423_v58 }
 0x284   : > { %v2272_v5 = vpop.f32.mrf.mxu1  ;;  %v2418_v6 = vpop.f32.mrf.mxu0  ;;  %v1474_v12 = vmul.f32 %v1450_v8, %v1450_v8  ;;  %1495 = vadd.xlane.f32.xlu0 %v1471_v7  ;;  %v2271_v16 = vadd.f32 %v2270_v61, %v2269_v53 }
 0x285   : > { %v1426_v9 = vmax.f32 %v3106_v2, 0.0  ;;  %v3114_v10 = vadd.f32 %v3076_v31, %v1267_v3  ;;  %v1278_v11 = vadd.f32 %v2418_v6, %v2262_v0  ;;  %v1448_v15 = vsel %vm1446_vm0, 0.0, %v1421_v1 }
 0x286   : > { %v2273_v13 = vpop.f32.mrf.mxu1  ;;  %v1269_v14 = vpop.f32.mrf.mxu0  ;;  %1501 = vadd.xlane.f32.xlu1 %v1474_v12  ;;  %v1472_v23 = vmul.f32 %v1448_v15, %v1448_v15 }
 0x287   : > { %v3121_v17 = vadd.f32 %v3076_v31, %v1278_v11  ;;  %v1270_v18 = vadd.f32 %v2256_v4, %v1269_v14  ;;  %v1424_v20 = vmax.f32 %v3114_v10, 0.0  ;;  %v1453_v27 = vsel %vm1446_vm0, 0.0, %v1426_v9 }
 0x288   : > { %v3124_v21 = vpop.f32.mrf.mxu1  ;;  %v2421_v22 = vpop.f32.mrf.mxu0  ;;  %1497 = vadd.xlane.f32.xlu0 %v1472_v23  ;;  %v2274_v30 = vadd.f32 %v2273_v13, %v2272_v5  ;;  %v1477_v35 = vmul.f32 %v1453_v27, %v1453_v27 }
 0x289   : > { %v1427_v24 = vmax.f32 %v3121_v17, 0.0  ;;  %v3128_v25 = vadd.f32 %v3076_v31, %v1270_v18  ;;  %v1291_v26 = vadd.f32 %v2421_v22, %v2271_v16  ;;  %v1451_v39 = vsel %vm1446_vm0, 0.0, %v1424_v20 }
 0x28a   : > { %v3134_v28 = vpop.f32.mrf.mxu1  ;;  %v1282_v29 = vpop.f32.mrf.mxu0  ;;  %v1475_v60 = vmul.f32 %v1451_v39, %v1451_v39 }
 0x28b   : > { %v1425_v32 = vmax.f32 %v3128_v25, 0.0  ;;  %v3138_v40 = vadd.f32 %v3076_v31, %v1291_v26  ;;  %v1283_v41 = vadd.f32 %v2265_v19, %v1282_v29  ;;  %v1454_v38 = vsel %vm1446_vm0, 0.0, %v1427_v24 }
 0x28c   : > { %v3140_v43 = vpop.f32.mrf.mxu1  ;;  %v2422_v34 = vpop.f32.mrf.mxu0  ;;  %v1478_v47 = vmul.f32 %v1454_v38, %v1454_v38  ;;  %1507 = vadd.xlane.f32.xlu0 %v1477_v35 }
 0x28d   : > { %v1430_v45 = vmax.f32 %v3138_v40, 0.0  ;;  %v3152_v48 = vadd.f32 %v3076_v31, %v1283_v41  ;;  %v1294_v37 = vadd.f32 %v2422_v34, %v2274_v30  ;;  %v1452_v52 = vsel %vm1446_vm0, 0.0, %v1425_v32 }
 0x28e   : > { %v2279_v49 = vpop.f32.mrf.mxu1  ;;  %v1285_v51 = vpop.f32.mrf.mxu0  ;;  %1509 = vadd.xlane.f32.xlu1 %v1478_v47  ;;  %v1476_v63 = vmul.f32 %v1452_v52, %v1452_v52  ;;  %v2277_v52 = vadd.f32 %v3134_v28, %v3124_v21 }
 0x28f   : > { %v3159_v53 = vadd.f32 %v3076_v31, %v1294_v37  ;;  %v1286_v54 = vadd.f32 %v2268_v42, %v1285_v51  ;;  %v1428_v55 = vmax.f32 %v3152_v48, 0.0  ;;  %v1457_v0 = vsel %vm1446_vm0, 0.0, %v1430_v45 }
 0x290   : > { %v2281_v57 = vpop.f32.mrf.mxu1  ;;  %1503 = vadd.xlane.f32.xlu0 %v1475_v60  ;;  %v1481_v7 = vmul.f32 %v1457_v0, %v1457_v0 }
 0x291   : > { %v1431_v61 = vmax.f32 %v3159_v53, 0.0  ;;  %v3164_v62 = vadd.f32 %v3076_v31, %v1286_v54  ;;  %v1455_v11 = vsel %vm1446_vm0, 0.0, %v1428_v55 }
 0x292   : > { %v2282_v3 = vpop.f32.mrf.mxu1  ;;  %1505 = vadd.xlane.f32.xlu1 %v1476_v63  ;;  %v1479_v15 = vmul.f32 %v1455_v11, %v1455_v11 }
 0x293   : > { %v1429_v4 = vmax.f32 %v3164_v62, 0.0  ;;  %v1458_v5 = vsel %vm1446_vm0, 0.0, %v1431_v61  ;;  %v2283_v47 = vadd.f32 %v2282_v3, %v2281_v57 }
 0x294   : > { %v2284_v6 = vpop.f32.mrf.mxu1  ;;  %v1482_v8 = vmul.f32 %v1458_v5, %v1458_v5  ;;  %1515 = vadd.xlane.f32.xlu0 %v1481_v7 }
 0x295   : > { %v1456_v13 = vsel %vm1446_vm0, 0.0, %v1429_v4 }
 0x296   : > { %v2285_v12 = vpop.f32.mrf.mxu1  ;;  %1517 = vadd.xlane.f32.xlu1 %v1482_v8  ;;  %v1480_v16 = vmul.f32 %v1456_v13, %v1456_v13  ;;  %v2280_v8 = vadd.f32 %v2279_v49, %v3140_v43 }
 0x297   : > { %v2286_v63 = vadd.f32 %v2285_v12, %v2284_v6 }
 0x298   : > { %v2287_v14 = vpop.f32.mrf.mxu1  ;;  %1511 = vadd.xlane.f32.xlu0 %v1479_v15 }
 0x29a   : > { %v2288_v18 = vpop.f32.mrf.mxu1  ;;  %1513 = vadd.xlane.f32.xlu1 %v1480_v16 }
 0x29b   : > { %v2289_v43 = vadd.f32 %v2288_v18, %v2287_v14 }
 0x29c   : > { %v2290_v19 = vpop.f32.mrf.mxu1 }
 0x29e   : > { %v2291_v22 = vpop.f32.mrf.mxu1 }
 0x2a0   : > { %v2293_v23 = vpop.f32.mrf.mxu1 }
 0x2a2   : > { %v2294_v26 = vpop.f32.mrf.mxu1 }
 0x2a3   : > { %v2295_v3 = vadd.f32 %v2294_v26, %v2293_v23 }
 0x2a4   : > { %v2296_v27 = vpop.f32.mrf.mxu1 }
 0x2a6   : > { %v2297_v29 = vpop.f32.mrf.mxu1 }
 0x2a8   : > { %v2299_v30 = vpop.f32.mrf.mxu1 }
 0x2aa   : > { %v2300_v41 = vpop.f32.mrf.mxu1 }
 0x2ac   : > { %v3183_v42 = vpop.f32.mrf.mxu1 }
 0x2ae   : > { %v3185_v34 = vpop.f32.mrf.mxu1 }
 0x2b0   : > { %v2305_v35 = vpop.f32.mrf.mxu1 }
 0x2b2   : > { %v2306_v38 = vpop.f32.mrf.mxu1 }
 0x2b4   : > { %v2308_v39 = vpop.f32.mrf.mxu1 }
 0x2b6   : > { %v2309_v37 = vpop.f32.mrf.mxu1 }
 0x2b8   : > { %v2425_v51 = vpop.f32.mrf.mxu1 }
 0x2b9   : > { %v1307_v54 = vadd.f32 %v2425_v51, %v2283_v47 }
 0x2ba   : > { %v1298_v60 = vpop.f32.mrf.mxu1 }
 0x2bb   : > { %v3190_v0 = vadd.f32 %v3076_v31, %v1307_v54  ;;  %v1299_v5 = vadd.f32 %v2277_v52, %v1298_v60  ;;  %v2298_v52 = vadd.f32 %v2297_v29, %v2296_v27 }
 0x2bc   : > { %v2426_v7 = vpop.f32.mrf.mxu1 }
 0x2bd   : > { %v1434_v11 = vmax.f32 %v3190_v0, 0.0  ;;  %v3195_v13 = vadd.f32 %v3076_v31, %v1299_v5  ;;  %v1310_v57 = vadd.f32 %v2426_v7, %v2286_v63  ;;  %v2292_v5 = vadd.f32 %v2291_v22, %v2290_v19 }
 0x2be   : > { %v1301_v15 = vpop.f32.mrf.mxu1 }
 0x2bf   : > { %v3563_v21 = vmax.f32 %v3195_v13, 0.0  ;;  %v3199_v28 = vadd.f32 %v3076_v31, %v1310_v57  ;;  %v1302_v6 = vadd.f32 %v2280_v8, %v1301_v15  ;;  %v1461_v12 = vsel %vm1446_vm0, 0.0, %v1434_v11 }
 0x2c0   : > { %v2429_v49 = vpop.f32.mrf.mxu1  ;;  %v1485_v16 = vmul.f32 %v1461_v12, %v1461_v12 }
 0x2c1   : > { %v1435_v47 = vmax.f32 %v3199_v28, 0.0  ;;  %v3207_v51 = vadd.f32 %v3076_v31, %v1302_v6  ;;  %v1323_v23 = vadd.f32 %v2429_v49, %v2295_v3  ;;  %v1459_v26 = vsel %vm1446_vm0, 0.0, %v3563_v21 }
 0x2c2   : > { %v1314_v54 = vpop.f32.mrf.mxu1  ;;  %1523 = vadd.xlane.f32.xlu0 %v1485_v16  ;;  %v1483_v57 = vmul.f32 %v1459_v26, %v1459_v26  ;;  %v2307_v6 = vadd.f32 %v2306_v38, %v2305_v35  ;;  %v2301_v16 = vadd.f32 %v2300_v41, %v2299_v30 }
 0x2c3   : > { %v3562_v60 = vmax.f32 %v3207_v51, 0.0  ;;  %v3215_v14 = vadd.f32 %v3076_v31, %v1323_v23  ;;  %v1315_v18 = vadd.f32 %v2289_v43, %v1314_v54  ;;  %v1462_v63 = vsel %vm1446_vm0, 0.0, %v1435_v47 }
 0x2c4   : > { %v2430_v7 = vpop.f32.mrf.mxu1  ;;  %v1486_v8 = vmul.f32 %v1462_v63, %v1462_v63  ;;  %v2310_v63 = vadd.f32 %v2309_v37, %v2308_v39  ;;  %v2304_v39 = vadd.f32 %v3185_v34, %v3183_v42 }
 0x2c5   : > { %v3561_v3 = vmax.f32 %v3215_v14, 0.0  ;;  %v3223_v27 = vadd.f32 %v3076_v31, %v1315_v18  ;;  %v1326_v29 = vadd.f32 %v2430_v7, %v2298_v52  ;;  %v1460_v15 = vsel %vm1446_vm0, 0.0, %v3562_v60 }
 0x2c6   : > { %v1317_v12 = vpop.f32.mrf.mxu1  ;;  %1525 = vadd.xlane.f32.xlu1 %v1486_v8  ;;  %1519 = vadd.xlane.f32.xlu0 %v1483_v57  ;;  %v1484_v26 = vmul.f32 %v1460_v15, %v1460_v15 }
 0x2c7   : > { %v3559_v19 = vmax.f32 %v3223_v27, 0.0  ;;  %v3231_v22 = vadd.f32 %v3076_v31, %v1326_v29  ;;  %v1318_v43 = vadd.f32 %v2292_v5, %v1317_v12  ;;  %v1465_v49 = vsel %vm1446_vm0, 0.0, %v3561_v3 }
 0x2c8   : > { %v2433_v23 = vpop.f32.mrf.mxu1  ;;  %v1489_v52 = vmul.f32 %v1465_v49, %v1465_v49 }
 0x2c9   : > { %v3560_v35 = vmax.f32 %v3231_v22, 0.0  ;;  %v3239_v38 = vadd.f32 %v3076_v31, %v1318_v43  ;;  %v1339_v54 = vadd.f32 %v2433_v23, %v2307_v6  ;;  %v1463_v18 = vsel %vm1446_vm0, 0.0, %v3559_v19 }
 0x2ca   : > { %v1330_v5 = vpop.f32.mrf.mxu1  ;;  %1521 = vadd.xlane.f32.xlu1 %v1484_v26  ;;  %1531 = vadd.xlane.f32.xlu0 %v1489_v52  ;;  %v1487_v15 = vmul.f32 %v1463_v18, %v1463_v18 }
 0x2cb   : > { %v3558_v30 = vmax.f32 %v3239_v38, 0.0  ;;  %v3247_v41 = vadd.f32 %v3076_v31, %v1339_v54  ;;  %v1331_v7 = vadd.f32 %v2301_v16, %v1330_v5  ;;  %v1466_v8 = vsel %vm1446_vm0, 0.0, %v3560_v35 }
 0x2cc   : > { %v2434_v57 = vpop.f32.mrf.mxu1  ;;  %v1490_v29 = vmul.f32 %v1466_v8, %v1466_v8 }
 0x2cd   : > { %v3256_v37 = vadd.f32 %v3076_v31, %v1331_v7  ;;  %v1342_v6 = vadd.f32 %v2434_v57, %v2310_v63  ;;  %v1464_v12 = vsel %vm1446_vm0, 0.0, %v3558_v30  ;;  %v3555_v49 = vmax.f32 %v3247_v41, 0.0 }
 0x2ce   : > { %v1333_v43 = vpop.f32.mrf.mxu1  ;;  %1533 = vadd.xlane.f32.xlu1 %v1490_v29  ;;  %1527 = vadd.xlane.f32.xlu0 %v1487_v15  ;;  %v1488_v34 = vmul.f32 %v1464_v12, %v1464_v12 }
 0x2cf   : > { %v3557_v16 = vmax.f32 %v3256_v37, 0.0  ;;  %v3265_v23 = vadd.f32 %v3076_v31, %v1342_v6  ;;  %v1334_v42 = vadd.f32 %v2304_v39, %v1333_v43  ;;  %v1469_v5 = vsel %vm1446_vm0, 0.0, %v3555_v49 }
 0x2d0   : > { %v1493_v8 = vmul.f32 %v1469_v5, %v1469_v5 }
 0x2d1   : > { %v3268_v26 = vadd.f32 %v3076_v31, %v1334_v42  ;;  %v1467_v52 = vsel %vm1446_vm0, 0.0, %v3557_v16  ;;  %v3554_v18 = vmax.f32 %v3265_v23, 0.0 }
 0x2d2   : > { %1529 = vadd.xlane.f32.xlu1 %v1488_v34  ;;  %v1491_v54 = vmul.f32 %v1467_v52, %v1467_v52 }
 0x2d3   : > { %v3556_v63 = vmax.f32 %v3268_v26, 0.0  ;;  %v1470_v57 = vsel %vm1446_vm0, 0.0, %v3554_v18 }
 0x2d4   : > { %1535 = vadd.xlane.f32.xlu0 %v1491_v54  ;;  %v1494_v29 = vmul.f32 %v1470_v57, %v1470_v57 }
 0x2d5   : > { %v1468_v31 = vsel %vm1446_vm0, 0.0, %v3556_v63 }
 0x2d6   : > { %v1492_v7 = vmul.f32 %v1468_v31, %v1468_v31 }
 0x2d8   : > { %1537 = vadd.xlane.f32.xlu1 %v1492_v7  ;;  %1539 = vadd.xlane.f32.xlu0 %v1493_v8 }
 0x2dc   : > { %1541 = vadd.xlane.f32.xlu1 %v1494_v29 }
 0x30b   : > { %v1500_v15 = vpop.xlane.xlu1 %1499 }
 0x30c   : > { %v1545_v39 = vadd.f32 1.0, %v1500_v15 }
 0x30d   : > { %v1496_v6 = vpop.xlane.xlu0 %1495 }
 0x30e   : > { %2625 = vrsqrt.f32 %v1545_v39  ;;  %v1543_v12 = vadd.f32 1.0, %v1496_v6  ;;  %vm1583_vm1 = vcmp.eq.f32.partialorder %v1545_v39, inf  ;;  %vm1585_vm2 = vcmp.eq.f32.partialorder %v1545_v39, 0.0 }
 0x30f   : > { %v1502_v43 = vpop.xlane.xlu1 %1501  ;;  %v1586_v49 = vand.u32 2147483648, %v1545_v39 }
 0x310   : > { %v1546_v42 = vadd.f32 1.0, %v1502_v43  ;;  %2627 = vrsqrt.f32 %v1543_v12  ;;  %vm1569_vm3 = vcmp.eq.f32.partialorder %v1543_v12, inf  ;;  %vm1571_vm4 = vcmp.eq.f32.partialorder %v1543_v12, 0.0 }
 0x311   : > { %v1498_v34 = vpop.xlane.xlu0 %1497  ;;  %v1572_v3 = vand.u32 2147483648, %v1543_v12 }
 0x312   : > { %2629 = vrsqrt.f32 %v1546_v42  ;;  %v1544_v52 = vadd.f32 1.0, %v1498_v34  ;;  %vm1590_vm5 = vcmp.eq.f32.partialorder %v1546_v42, inf  ;;  %vm1592_vm6 = vcmp.eq.f32.partialorder %v1546_v42, 0.0 }
 0x314   : > { %2631 = vrsqrt.f32 %v1544_v52  ;;  %vm1576_vm7 = vcmp.eq.f32.partialorder %v1544_v52, inf  ;;  %v1579_v21 = vand.u32 2147483648, %v1544_v52  ;;  %vm1578_vm8 = vcmp.eq.f32.partialorder %v1544_v52, 0.0 }
 0x315   : > { %v1508_v54 = vpop.xlane.xlu0 %1507 }
 0x316   : > { %v3289_v5 = vadd.f32 1.0, %v1508_v54 }
 0x317   : > { %v1510_v31 = vpop.xlane.xlu1 %1509 }
 0x318   : > { %v3291_v7 = vadd.f32 1.0, %v1510_v31  ;;  %2633 = vrsqrt.f32 %v3289_v5  ;;  %vm1611_vm9 = vcmp.eq.f32.partialorder %v3289_v5, inf  ;;  %vm1613_vm10 = vcmp.eq.f32.partialorder %v3289_v5, 0.0 }
 0x319   : > { %v1504_v57 = vpop.xlane.xlu0 %1503 }
 0x31a   : > { %2635 = vrsqrt.f32 %v3291_v7  ;;  %v3295_v15 = vadd.f32 1.0, %v1504_v57  ;;  %vm1618_vm11 = vcmp.eq.f32.partialorder %v3291_v7, inf  ;;  %vm1620_vm12 = vcmp.eq.f32.partialorder %v3291_v7, 0.0 }
 0x31b   : > { %v2626_v8 = vpop.eup %2625  ;;  %v1506_v6 = vpop.xlane.xlu1 %1505 }
 0x31c   : > { %v1582_v29 = vmul.f32 %v2626_v8, %v1545_v39  ;;  %v3297_v43 = vadd.f32 1.0, %v1506_v6  ;;  %2637 = vrsqrt.f32 %v3295_v15  ;;  %vm1597_vm13 = vcmp.eq.f32.partialorder %v3295_v15, inf }
 0x31d   : > { %v2628_v34 = vpop.eup %2627  ;;  %v1516_v31 = vpop.xlane.xlu0 %1515  ;;  %vm1599_vm14 = vcmp.eq.f32.partialorder %v3295_v15, 0.0 }
 0x31e   : > { %v1584_v54 = vsel %vm1583_vm1, %v1545_v39, %v1582_v29  ;;  %2639 = vrsqrt.f32 %v3297_v43  ;;  %v1568_v8 = vmul.f32 %v2628_v34, %v1543_v12  ;;  %v3303_v63 = vadd.f32 1.0, %v1516_v31 }
 0x31f   : > { %v2630_v18 = vpop.eup %2629  ;;  %v1518_v57 = vpop.xlane.xlu1 %1517  ;;  %v1587_v30 = vsel %vm1585_vm2, %v1586_v49, %v1584_v54  ;;  %v1593_v29 = vand.u32 2147483648, %v1546_v42  ;;  %vm1604_vm15 = vcmp.eq.f32.partialorder %v3297_v43, inf  ;;  %vm1606_vm1 = vcmp.eq.f32.partialorder %v3297_v43, 0.0 }
 0x320   : > { %v1589_v6 = vmul.f32 %v2630_v18, %v1546_v42  ;;  %v3305_v16 = vadd.f32 1.0, %v1518_v57  ;;  %v1570_v19 = vsel %vm1569_vm3, %v1543_v12, %v1568_v8  ;;  %2641 = vrsqrt.f32 %v3303_v63 }
 0x321   : > { %v2632_v35 = vpop.eup %2631  ;;  %v1512_v18 = vpop.xlane.xlu0 %1511  ;;  %v1737_v49 = vsel %vm1446_vm0, %v1587_v30, %v1422_v46  ;;  %v1573_v54 = vsel %vm1571_vm4, %v1572_v3, %v1570_v19  ;;  %vm1639_vm2 = vcmp.eq.f32.partialorder %v3303_v63, inf  ;;  %vm1641_vm3 = vcmp.eq.f32.partialorder %v3303_v63, 0.0 }
 0x322   : > { %v1591_v60 = vsel %vm1590_vm5, %v1546_v42, %v1589_v6  ;;  %v1575_v34 = vmul.f32 %v2632_v35, %v1544_v52  ;;  %2643 = vrsqrt.f32 %v3305_v16  ;;  %v3325_v3 = vadd.f32 1.0, %v1512_v18 }
 0x323   : > { %v1594_v39 = vsel %vm1592_vm6, %v1593_v29, %v1591_v60  ;;  %v1514_v31 = vpop.xlane.xlu1 %1513  ;;  %v1735_v50 = vsel %vm1446_vm0, %v1573_v54, %v1420_v56  ;;  %v1621_v56 = vand.u32 2147483648, %v3291_v7  ;;  %v1607_v54 = vand.u32 2147483648, %v3297_v43 }
 0x324   : > { %v1738_v60 = vsel %vm1446_vm0, %v1594_v39, %v1423_v58  ;;  %v1577_v36 = vsel %vm1576_vm7, %v1544_v52, %v1575_v34  ;;  %v3327_v19 = vadd.f32 1.0, %v1514_v31  ;;  %v1614_v52 = vand.u32 2147483648, %v3289_v5 }
 0x325   : > { %v2128_v35 = vpack.c.bf16 %v1738_v60, %v1737_v49  ;;  %v2634_v42 = vpop.eup %2633  ;;  %v1580_v46 = vsel %vm1578_vm8, %v1579_v21, %v1577_v36  ;;  %2645 = vrsqrt.f32 %v3325_v3  ;;  %vm1646_vm4 = vcmp.eq.f32.partialorder %v3305_v16, inf }
 0x326   : > { %v1736_v58 = vsel %vm1446_vm0, %v1580_v46, %v1421_v1  ;;  %v1610_v21 = vmul.f32 %v2634_v42, %v3289_v5  ;;  %2647 = vrsqrt.f32 %v3327_v19  ;;  %v1649_v25 = vand.u32 2147483648, %v3305_v16 }
 0x327   : > { %v2636_v30 = vpop.eup %2635  ;;  %2180 = vst [vmem:[%s3317_s12 + $0x8] sm:$0xff] %v2128_v35   ;;  %v2123_v12 = vpack.c.bf16 %v1736_v58, %v1735_v50  ;;  %vm1648_vm5 = vcmp.eq.f32.partialorder %v3305_v16, 0.0  ;;  %vm1625_vm6 = vcmp.eq.f32.partialorder %v3325_v3, inf  ;;  %vm1627_vm7 = vcmp.eq.f32.partialorder %v3325_v3, 0.0 }
 0x328   : > { %v1617_v8 = vmul.f32 %v2636_v30, %v3291_v7  ;;  %v1612_v44 = vsel %vm1611_vm9, %v3289_v5, %v1610_v21  ;;  %vm1632_vm8 = vcmp.eq.f32.partialorder %v3327_v19, inf  ;;  %vm1634_vm9 = vcmp.eq.f32.partialorder %v3327_v19, 0.0 }
 0x329   : > { %v2638_v59 = vpop.eup %2637  ;;  %2124 = vst [vmem:[%s3317_s12] sm:$0xff] %v2123_v12   ;;  %v1615_v1 = vsel %vm1613_vm10, %v1614_v52, %v1612_v44 }
 0x32a   : > { %v1619_v57 = vsel %vm1618_vm11, %v3291_v7, %v1617_v8  ;;  %v1596_v39 = vmul.f32 %v2638_v59, %v3295_v15  ;;  %v1741_v5 = vsel %vm1446_vm0, %v1615_v1, %v1426_v9  ;;  %v1600_v7 = vand.u32 2147483648, %v3295_v15 }
 0x32b   : > { %v2640_v6 = vpop.eup %2639  ;;  %v1622_v29 = vsel %vm1620_vm12, %v1621_v56, %v1619_v57 }
 0x32c   : > { %v1742_v34 = vsel %vm1446_vm0, %v1622_v29, %v1427_v24  ;;  %v1603_v18 = vmul.f32 %v2640_v6, %v3297_v43  ;;  %v1598_v49 = vsel %vm1597_vm13, %v3295_v15, %v1596_v39 }
 0x32d   : > { %v2138_v31 = vpack.c.bf16 %v1742_v34, %v1741_v5  ;;  %v1601_v2 = vsel %vm1599_vm14, %v1600_v7, %v1598_v49  ;;  %v2642_v17 = vpop.eup %2641 }
 0x32e   : > { %v1605_v9 = vsel %vm1604_vm15, %v3297_v43, %v1603_v18  ;;  %v1739_v60 = vsel %vm1446_vm0, %v1601_v2, %v1424_v20  ;;  %v1638_v35 = vmul.f32 %v2642_v17, %v3303_v63  ;;  %v1642_v43 = vand.u32 2147483648, %v3303_v63 }
 0x32f   : > { %2182 = vst [vmem:[%s3317_s12 + $0x18] sm:$0xff] %v2138_v31   ;;  %v1608_v24 = vsel %vm1606_vm1, %v1607_v54, %v1605_v9  ;;  %v2644_v36 = vpop.eup %2643 }
 0x330   : > { %v1740_v15 = vsel %vm1446_vm0, %v1608_v24, %v1425_v32  ;;  %v1640_v46 = vsel %vm1639_vm2, %v3303_v63, %v1638_v35  ;;  %v1645_v10 = vmul.f32 %v2644_v36, %v3305_v16 }
 0x331   : > { %v2133_v42 = vpack.c.bf16 %v1740_v15, %v1739_v60  ;;  %v1643_v20 = vsel %vm1641_vm3, %v1642_v43, %v1640_v46 }
 0x332   : > { %v1647_v32 = vsel %vm1646_vm4, %v3305_v16, %v1645_v10  ;;  %v2646_v30 = vpop.eup %2645  ;;  %v1745_v63 = vsel %vm1446_vm0, %v1643_v20, %v1430_v45  ;;  %v1628_v16 = vand.u32 2147483648, %v3325_v3  ;;  %v1635_v45 = vand.u32 2147483648, %v3327_v19 }
 0x333   : > { %2181 = vst [vmem:[%s3317_s12 + $0x10] sm:$0xff] %v2133_v42   ;;  %v1650_v50 = vsel %vm1648_vm5, %v1649_v25, %v1647_v32  ;;  %v2648_v58 = vpop.eup %2647  ;;  %v1624_v12 = vmul.f32 %v2646_v30, %v3325_v3 }
 0x334   : > { %v1746_v21 = vsel %vm1446_vm0, %v1650_v50, %v1431_v61  ;;  %v1631_v8 = vmul.f32 %v2648_v58, %v3327_v19 }
 0x335   : > { %v2148_v52 = vpack.c.bf16 %v1746_v21, %v1745_v63  ;;  %v1626_v40 = vsel %vm1625_vm6, %v3325_v3, %v1624_v12 }
 0x336   : > { %v1629_v53 = vsel %vm1627_vm7, %v1628_v16, %v1626_v40  ;;  %v1633_v61 = vsel %vm1632_vm8, %v3327_v19, %v1631_v8 }
 0x337   : > { %2184 = vst [vmem:[%s3317_s12 + $0x28] sm:$0xff] %v2148_v52   ;;  %v1636_v44 = vsel %vm1634_vm9, %v1635_v45, %v1633_v61  ;;  %v1743_v56 = vsel %vm1446_vm0, %v1629_v53, %v1428_v55 }
 0x338   : > { %v1744_v3 = vsel %vm1446_vm0, %v1636_v44, %v1429_v4 }
 0x339   : > { %v2143_v59 = vpack.c.bf16 %v1744_v3, %v1743_v56 }
 0x33b   : > { %2183 = vst [vmem:[%s3317_s12 + $0x20] sm:$0xff] %v2143_v59   ;;  %v3571_v59 = vmax.f32 %v3195_v13, 0.0 }
 0x34b   : > { %v1524_v1 = vpop.xlane.xlu0 %1523 }
 0x34c   : > { %v1557_v57 = vadd.f32 1.0, %v1524_v1 }
 0x34e   : > { %2649 = vrsqrt.f32 %v1557_v57  ;;  %vm1667_vm10 = vcmp.eq.f32.partialorder %v1557_v57, inf  ;;  %vm1669_vm11 = vcmp.eq.f32.partialorder %v1557_v57, 0.0  ;;  %v1670_v60 = vand.u32 2147483648, %v1557_v57 }
 0x34f   : > { %v1526_v6 = vpop.xlane.xlu1 %1525  ;;  %v1520_v29 = vpop.xlane.xlu0 %1519 }
 0x350   : > { %v1558_v39 = vadd.f32 1.0, %v1526_v6  ;;  %v1555_v19 = vadd.f32 1.0, %v1520_v29 }
 0x352   : > { %2651 = vrsqrt.f32 %v1558_v39  ;;  %vm1674_vm12 = vcmp.eq.f32.partialorder %v1558_v39, inf  ;;  %vm1676_vm13 = vcmp.eq.f32.partialorder %v1558_v39, 0.0  ;;  %v1677_v42 = vand.u32 2147483648, %v1558_v39 }
 0x353   : > { %2653 = vrsqrt.f32 %v1555_v19  ;;  %v1522_v48 = vpop.xlane.xlu1 %1521  ;;  %v1532_v5 = vpop.xlane.xlu0 %1531  ;;  %vm1653_vm14 = vcmp.eq.f32.partialorder %v1555_v19, inf  ;;  %vm1655_vm15 = vcmp.eq.f32.partialorder %v1555_v19, 0.0  ;;  %v1656_v32 = vand.u32 2147483648, %v1555_v19 }
 0x354   : > { %v1556_v34 = vadd.f32 1.0, %v1522_v48  ;;  %v3416_v55 = vadd.f32 1.0, %v1532_v5 }
 0x356   : > { %2655 = vrsqrt.f32 %v1556_v34  ;;  %vm1660_vm1 = vcmp.eq.f32.partialorder %v1556_v34, inf  ;;  %vm1662_vm2 = vcmp.eq.f32.partialorder %v1556_v34, 0.0  ;;  %v1663_v53 = vand.u32 2147483648, %v1556_v34 }
 0x357   : > { %2657 = vrsqrt.f32 %v3416_v55  ;;  %v1534_v62 = vpop.xlane.xlu1 %1533  ;;  %v1528_v4 = vpop.xlane.xlu0 %1527  ;;  %vm1695_vm3 = vcmp.eq.f32.partialorder %v3416_v55, inf  ;;  %vm1697_vm4 = vcmp.eq.f32.partialorder %v3416_v55, 0.0  ;;  %v1698_v56 = vand.u32 2147483648, %v3416_v55 }
 0x358   : > { %v3419_v7 = vadd.f32 1.0, %v1534_v62  ;;  %v3421_v18 = vadd.f32 1.0, %v1528_v4 }
 0x35a   : > { %2659 = vrsqrt.f32 %v3419_v7  ;;  %vm1702_vm5 = vcmp.eq.f32.partialorder %v3419_v7, inf  ;;  %vm1704_vm6 = vcmp.eq.f32.partialorder %v3419_v7, 0.0  ;;  %vm1681_vm7 = vcmp.eq.f32.partialorder %v3421_v18, inf }
 0x35b   : > { %v2650_v31 = vpop.eup %2649  ;;  %2661 = vrsqrt.f32 %v3421_v18  ;;  %v1530_v49 = vpop.xlane.xlu1 %1529  ;;  %v1684_v4 = vand.u32 2147483648, %v3421_v18  ;;  %vm1683_vm8 = vcmp.eq.f32.partialorder %v3421_v18, 0.0 }
 0x35c   : > { %v1666_v54 = vmul.f32 %v2650_v31, %v1557_v57  ;;  %v3425_v2 = vadd.f32 1.0, %v1530_v49  ;;  %v3573_v31 = vmax.f32 %v3215_v14, 0.0 }
 0x35d   : > { %v1536_v9 = vpop.xlane.xlu0 %1535 }
 0x35e   : > { %v1668_v17 = vsel %vm1667_vm10, %v1557_v57, %v1666_v54  ;;  %2663 = vrsqrt.f32 %v3425_v2  ;;  %v3428_v15 = vadd.f32 1.0, %v1536_v9  ;;  %v3572_v57 = vmax.f32 %v3207_v51, 0.0 }
 0x35f   : > { %v2652_v24 = vpop.eup %2651  ;;  %v1671_v43 = vsel %vm1669_vm11, %v1670_v60, %v1668_v17  ;;  %v3574_v54 = vmax.f32 %v3231_v22, 0.0  ;;  %vm1688_vm9 = vcmp.eq.f32.partialorder %v3425_v2, inf  ;;  %v1691_v60 = vand.u32 2147483648, %v3425_v2 }
 0x360   : > { %v2654_v35 = vpop.eup %2653  ;;  %v1673_v36 = vmul.f32 %v2652_v24, %v1558_v39  ;;  %2665 = vrsqrt.f32 %v3428_v15  ;;  %v1749_v52 = vsel %vm1446_vm0, %v1671_v43, %v1434_v11  ;;  %vm1690_vm10 = vcmp.eq.f32.partialorder %v3425_v2, 0.0 }
 0x361   : > { %v1652_v46 = vmul.f32 %v2654_v35, %v1555_v19  ;;  %v1538_v10 = vpop.xlane.xlu1 %1537  ;;  %v1540_v20 = vpop.xlane.xlu0 %1539  ;;  %v3576_v43 = vmax.f32 %v3239_v38, 0.0  ;;  %vm1709_vm11 = vcmp.eq.f32.partialorder %v3428_v15, inf }
 0x362   : > { %v1675_v25 = vsel %vm1674_vm12, %v1558_v39, %v1673_v36  ;;  %v3431_v30 = vadd.f32 1.0, %v1538_v10  ;;  %v3433_v50 = vadd.f32 1.0, %v1540_v20  ;;  %v1705_v39 = vand.u32 2147483648, %v3419_v7 }
 0x363   : > { %v2656_v58 = vpop.eup %2655  ;;  %v1678_v63 = vsel %vm1676_vm13, %v1677_v42, %v1675_v25  ;;  %v1654_v21 = vsel %vm1653_vm14, %v1555_v19, %v1652_v46  ;;  %v1712_v25 = vand.u32 2147483648, %v3428_v15  ;;  %vm1711_vm12 = vcmp.eq.f32.partialorder %v3428_v15, 0.0 }
 0x364   : > { %v2658_v12 = vpop.eup %2657  ;;  %v1750_v16 = vsel %vm1446_vm0, %v1678_v63, %v1435_v47  ;;  %v1659_v8 = vmul.f32 %v2656_v58, %v1556_v34  ;;  %2667 = vrsqrt.f32 %v3431_v30  ;;  %v1657_v45 = vsel %vm1655_vm15, %v1656_v32, %v1654_v21 }
 0x365   : > { %v2158_v40 = vpack.c.bf16 %v1750_v16, %v1749_v52  ;;  %v1694_v61 = vmul.f32 %v2658_v12, %v3416_v55  ;;  %2669 = vrsqrt.f32 %v3433_v50  ;;  %v1542_v0 = vpop.xlane.xlu1 %1541  ;;  %v1747_v1 = vsel %vm1446_vm0, %v1657_v45, %v3571_v59 }
 0x366   : > { %v1661_v44 = vsel %vm1660_vm1, %v1556_v34, %v1659_v8  ;;  %v1566_v34 = vadd.f32 1.0, %v1542_v0  ;;  %vm1716_vm13 = vcmp.eq.f32.partialorder %v3431_v30, inf  ;;  %v1719_v38 = vand.u32 2147483648, %v3431_v30 }
 0x367   : > { %v2660_v11 = vpop.eup %2659  ;;  %2186 = vst [vmem:[%s3317_s12 + $0x38] sm:$0xff] %v2158_v40   ;;  %v1664_v28 = vsel %vm1662_vm2, %v1663_v53, %v1661_v44  ;;  %v1696_v47 = vsel %vm1695_vm3, %v3416_v55, %v1694_v61  ;;  %vm1718_vm14 = vcmp.eq.f32.partialorder %v3431_v30, 0.0  ;;  %v3577_v52 = vmax.f32 %v3256_v37, 0.0 }
 0x368   : > { %v2662_v3 = vpop.eup %2661  ;;  %v1748_v6 = vsel %vm1446_vm0, %v1664_v28, %v3572_v57  ;;  %v1701_v29 = vmul.f32 %v2660_v11, %v3419_v7  ;;  %v1699_v48 = vsel %vm1697_vm4, %v1698_v56, %v1696_v47  ;;  %2671 = vrsqrt.f32 %v1566_v34 }
 0x369   : > { %v2153_v19 = vpack.c.bf16 %v1748_v6, %v1747_v1  ;;  %v1680_v5 = vmul.f32 %v2662_v3, %v3421_v18  ;;  %v1753_v49 = vsel %vm1446_vm0, %v1699_v48, %v3573_v31  ;;  %v3578_v16 = vmax.f32 %v3268_v26, 0.0 }
 0x36a   : > { %v1703_v55 = vsel %vm1702_vm5, %v3419_v7, %v1701_v29  ;;  %vm1723_vm15 = vcmp.eq.f32.partialorder %v3433_v50, inf  ;;  %v1726_v53 = vand.u32 2147483648, %v3433_v50  ;;  %vm1725_vm1 = vcmp.eq.f32.partialorder %v3433_v50, 0.0 }
 0x36b   : > { %v2664_v13 = vpop.eup %2663  ;;  %2185 = vst [vmem:[%s3317_s12 + $0x30] sm:$0xff] %v2153_v19   ;;  %v1706_v51 = vsel %vm1704_vm6, %v1705_v39, %v1703_v55  ;;  %v1682_v62 = vsel %vm1681_vm7, %v3421_v18, %v1680_v5  ;;  %v3575_v18 = vmax.f32 %v3223_v27, 0.0  ;;  %vm1730_vm2 = vcmp.eq.f32.partialorder %v1566_v34, inf }
 0x36c   : > { %v1754_v7 = vsel %vm1446_vm0, %v1706_v51, %v3574_v54  ;;  %v1687_v9 = vmul.f32 %v2664_v13, %v3425_v2  ;;  %v1685_v24 = vsel %vm1683_vm8, %v1684_v4, %v1682_v62  ;;  %v1733_v44 = vand.u32 2147483648, %v1566_v34 }
 0x36d   : > { %v2168_v17 = vpack.c.bf16 %v1754_v7, %v1753_v49  ;;  %v2666_v35 = vpop.eup %2665  ;;  %v1751_v42 = vsel %vm1446_vm0, %v1685_v24, %v3575_v18  ;;  %vm1732_vm3 = vcmp.eq.f32.partialorder %v1566_v34, 0.0  ;;  %v3579_v11 = vmax.f32 %v3247_v41, 0.0 }
 0x36e   : > { %v1689_v14 = vsel %vm1688_vm9, %v3425_v2, %v1687_v9  ;;  %v1708_v36 = vmul.f32 %v2666_v35, %v3428_v15  ;;  %v3580_v47 = vmax.f32 %v3265_v23, 0.0 }
 0x36f   : > { %2188 = vst [vmem:[%s3317_s12 + $0x48] sm:$0xff] %v2168_v17   ;;  %v1692_v22 = vsel %vm1690_vm10, %v1691_v60, %v1689_v14 }
 0x370   : > { %v1752_v46 = vsel %vm1446_vm0, %v1692_v22, %v3576_v43  ;;  %v1710_v2 = vsel %vm1709_vm11, %v3428_v15, %v1708_v36 }
 0x371   : > { %v2668_v10 = vpop.eup %2667  ;;  %v2163_v20 = vpack.c.bf16 %v1752_v46, %v1751_v42  ;;  %v1713_v58 = vsel %vm1711_vm12, %v1712_v25, %v1710_v2 }
 0x372   : > { %v1715_v27 = vmul.f32 %v2668_v10, %v3431_v30  ;;  %v2670_v32 = vpop.eup %2669  ;;  %v1755_v15 = vsel %vm1446_vm0, %v1713_v58, %v3577_v52 }
 0x373   : > { %2187 = vst [vmem:[%s3317_s12 + $0x40] sm:$0xff] %v2163_v20   ;;  %v1722_v21 = vmul.f32 %v2670_v32, %v3433_v50 }
 0x374   : > { %v1717_v63 = vsel %vm1716_vm13, %v3431_v30, %v1715_v27 }
 0x375   : > { %v1720_v12 = vsel %vm1718_vm14, %v1719_v38, %v1717_v63  ;;  %v1724_v45 = vsel %vm1723_vm15, %v3433_v50, %v1722_v21  ;;  %v2672_v30 = vpop.eup %2671 }
 0x376   : > { %v1756_v8 = vsel %vm1446_vm0, %v1720_v12, %v3578_v16  ;;  %v1729_v37 = vmul.f32 %v2672_v30, %v1566_v34  ;;  %v1727_v61 = vsel %vm1725_vm1, %v1726_v53, %v1724_v45 }
 0x377   : > { %v2173_v40 = vpack.c.bf16 %v1756_v8, %v1755_v15  ;;  %v1757_v28 = vsel %vm1446_vm0, %v1727_v61, %v3579_v11 }
 0x378   : > { %v1731_v26 = vsel %vm1730_vm2, %v1566_v34, %v1729_v37 }
 0x379   : > { %2189 = vst [vmem:[%s3317_s12 + $0x50] sm:$0xff] %v2173_v40   ;;  %v1734_v0 = vsel %vm1732_vm3, %v1733_v44, %v1731_v26 }
 0x37a   : > { %v1758_v56 = vsel %vm1446_vm0, %v1734_v0, %v3580_v47 }
 0x37b   : > { %v2178_v3 = vpack.c.bf16 %v1758_v56, %v1757_v28 }
 0x37d   : > { %2190 = vst [vmem:[%s3317_s12 + $0x58] sm:$0xff] %v2178_v3  }
 0x37e PF: > { %s16_s20 = sadd.s32 1, %s2841_s20   ;;  %s3581_s13 = smov %s2981_s15 }
 0x37f   : > { %p13_p0 = scmp.ge.s32.totalorder %s16_s20, 4   ;;  %s3582_s15 = smov %s2825_s16 }
 0x380   : > { %s3583_s16 = smov %s2829_s17  ;;  %s3584_s17 = smov %s3581_s13 }
 0x381   : > { %s3585_s18 = smov %s2837_s19  ;;  %s3586_s19 = smov %s3588_s5 }
 0x382   :  { %15 = sbr.rel (!%p13_p0) target bundleno = 4 (0x4), region = 96 }
 0x387   :  { %1901 = vsyncpa [#allocation4], 1 }
 0x388   :  { %1903 = vsyncpa [#allocation4 + $0x1], 1 }
 0x389   :  { %1904 = vsyncpa [#allocation6], 1 }

</bundles_post_ra>
